<compile_context>
chip_gen: v6e
topology: v6e:2x2x1
jax: 0.10.0
libtpu: 0.0.40
codegen_flags: <defaults>
</compile_context>

<pallas_src>
import jax
import jax.numpy as jnp
from jax.experimental import pallas as pl
from jax.experimental.pallas import tpu as pltpu

# ---- model hyperparameters (small, consistent with the module) ----
BATCH = 8          # batch size (>=2 needed for BatchNorm1d batch stats)
CHANNELS = 1       # args.channels
IMG_SIZE = 16      # args.img_size
IMG_FLAT = CHANNELS * IMG_SIZE * IMG_SIZE   # 256
HIDDEN = 512
LATENT_DIM = 32    # args.latent_dim
N_CLASSES = 10     # args.n_classes
BN_EPS = 1e-5
NEG_SLOPE = 0.2


def _leaky_relu(x, slope=NEG_SLOPE):
    return jnp.where(x > 0, x, slope * x)


def encoder_kernel(x_ref, w1_ref, b1_ref, w2_ref, b2_ref,
                   gamma_ref, beta_ref, wd_ref, bd_ref, wc_ref, bc_ref,
                   zg_ref, zc_ref):
    x = x_ref[...]  # (B, IMG_FLAT) f32

    # Linear(IMG_FLAT, 512) + LeakyReLU(0.2) -- bf16 MXU inputs, f32 accumulate.
    h1 = jnp.dot(x.astype(jnp.bfloat16), w1_ref[...],
                 preferred_element_type=jnp.float32) + b1_ref[...]
    h1 = _leaky_relu(h1)

    # Linear(512, 512)
    h2 = jnp.dot(h1.astype(jnp.bfloat16), w2_ref[...],
                 preferred_element_type=jnp.float32) + b2_ref[...]

    # BatchNorm1d(512), training-mode semantics (batch mean, biased batch var).
    # Single pass: mean and E[x^2]; var = E[x^2] - mean^2.
    inv_n = 1.0 / jnp.float32(h2.shape[0])
    mean = jnp.sum(h2, axis=0, keepdims=True) * inv_n
    msq = jnp.sum(h2 * h2, axis=0, keepdims=True) * inv_n
    var = jnp.maximum(msq - mean * mean, 0.0)
    h2n = (h2 - mean) * jax.lax.rsqrt(var + BN_EPS)
    h2n = h2n * gamma_ref[...] + beta_ref[...]

    # LeakyReLU(0.2)
    h3 = _leaky_relu(h2n)
    h3_bf16 = h3.astype(jnp.bfloat16)

    # lin_D: Linear(512, latent_dim)
    zg = jnp.dot(h3_bf16, wd_ref[...],
                 preferred_element_type=jnp.float32) + bd_ref[...]
    zg_ref[...] = zg.astype(zg_ref.dtype)

    # lin_D_cat: Linear(512, n_classes) + Softmax (dim=1 for 2-D input)
    logits = jnp.dot(h3_bf16, wc_ref[...],
                     preferred_element_type=jnp.float32) + bc_ref[...]
    logits = logits - jnp.max(logits, axis=-1, keepdims=True)
    p = jnp.exp(logits)
    zc = p / jnp.sum(p, axis=-1, keepdims=True)
    zc_ref[...] = zc.astype(zc_ref.dtype)


def encoder_forward(img, params):
    """img: (B, C, H, W) f32 -> (z_gauss (B, LATENT_DIM), z_cat (B, N_CLASSES))."""
    w1, b1, w2, b2, gamma, beta, wd, bd, wc, bc = params
    B = img.shape[0]

    # Matches PyTorch img.view(img.shape[0], -1).
    x = img.reshape(B, IMG_FLAT)

    # Cast only the weight matrices to bf16 (halves weight HBM traffic and uses
    # the native MXU input dtype); biases / gamma / beta / activations stay f32.
    w1b = w1.astype(jnp.bfloat16)
    w2b = w2.astype(jnp.bfloat16)
    wdb = wd.astype(jnp.bfloat16)
    wcb = wc.astype(jnp.bfloat16)

    def full(a):
        return pl.BlockSpec(a.shape, lambda: tuple(0 for _ in a.shape))

    inputs = (x, w1b, b1, w2b, b2, gamma, beta, wdb, bd, wcb, bc)

    flops = 2 * B * (IMG_FLAT * HIDDEN + HIDDEN * HIDDEN
                     + HIDDEN * LATENT_DIM + HIDDEN * N_CLASSES)
    transcendentals = B * N_CLASSES + HIDDEN  # softmax exp + BN rsqrt
    bytes_accessed = (
        sum(int(a.size) * a.dtype.itemsize for a in inputs)
        + B * LATENT_DIM * 4 + B * N_CLASSES * 4
    )

    z_gauss, z_cat = pl.pallas_call(
        encoder_kernel,
        out_shape=(
            jax.ShapeDtypeStruct((B, LATENT_DIM), jnp.float32),
            jax.ShapeDtypeStruct((B, N_CLASSES), jnp.float32),
        ),
        grid_spec=pltpu.PrefetchScalarGridSpec(
            num_scalar_prefetch=0,
            grid=(),  # single step: whole (small) batch resident; weights stay in VMEM
            in_specs=[full(a) for a in inputs],
            out_specs=(
                pl.BlockSpec((B, LATENT_DIM), lambda: (0, 0)),
                pl.BlockSpec((B, N_CLASSES), lambda: (0, 0)),
            ),
        ),
        compiler_params=pltpu.CompilerParams(
            vmem_limit_bytes=8 << 20,  # ~2 MiB live; leave headroom, v7x-safe
        ),
        cost_estimate=pl.CostEstimate(
            flops=flops,
            transcendentals=transcendentals,
            bytes_accessed=bytes_accessed,
        ),
    )(*inputs)

    return z_gauss, z_cat


def init_params(key):
    """Deterministic init; shapes match the nn.Module (weights stored as (in, out))."""
    ks = jax.random.split(key, 8)

    def linear(kw, kb, fan_in, fan_out):
        bound = 1.0 / jnp.sqrt(jnp.float32(fan_in))
        w = jax.random.uniform(kw, (fan_in, fan_out), jnp.float32, -bound, bound)
        b = jax.random.uniform(kb, (1, fan_out), jnp.float32, -bound, bound)
        return w, b

    w1, b1 = linear(ks[0], ks[1], IMG_FLAT, HIDDEN)
    w2, b2 = linear(ks[2], ks[3], HIDDEN, HIDDEN)
    wd, bd = linear(ks[4], ks[5], HIDDEN, LATENT_DIM)   # lin_D
    wc, bc = linear(ks[6], ks[7], HIDDEN, N_CLASSES)    # lin_D_cat[0]
    gamma = jnp.ones((1, HIDDEN), jnp.float32)          # BatchNorm1d weight
    beta = jnp.zeros((1, HIDDEN), jnp.float32)          # BatchNorm1d bias
    return (w1, b1, w2, b2, gamma, beta, wd, bd, wc, bc)


if __name__ == "__main__":
    key = jax.random.PRNGKey(0)
    k_params, k_img = jax.random.split(key)

    params = init_params(k_params)
    img = jax.random.normal(k_img, (BATCH, CHANNELS, IMG_SIZE, IMG_SIZE), jnp.float32)

    z_gauss, z_cat = encoder_forward(img, params)
    jax.block_until_ready((z_gauss, z_cat))

    assert z_gauss.shape == (BATCH, LATENT_DIM)
    assert z_cat.shape == (BATCH, N_CLASSES)
    assert bool(jnp.all(jnp.isfinite(z_gauss)))
    assert bool(jnp.all(jnp.isfinite(z_cat)))
    assert bool(jnp.all(z_cat >= 0.0))
    assert bool(jnp.all(jnp.abs(jnp.sum(z_cat, axis=-1) - 1.0) < 1e-3))  # softmax rows
    print("KERNEL_OK")
</pallas_src>

<mosaic_0001>
module attributes {stable_mosaic.version = 11 : i64} {
  func.func @encoder_kernel(%arg0: memref<8x256xf32, #tpu.memory_space<vmem>>, %arg1: memref<256x512xbf16, #tpu.memory_space<vmem>>, %arg2: memref<1x512xf32, #tpu.memory_space<vmem>>, %arg3: memref<512x512xbf16, #tpu.memory_space<vmem>>, %arg4: memref<1x512xf32, #tpu.memory_space<vmem>>, %arg5: memref<1x512xf32, #tpu.memory_space<vmem>>, %arg6: memref<1x512xf32, #tpu.memory_space<vmem>>, %arg7: memref<512x32xbf16, #tpu.memory_space<vmem>>, %arg8: memref<1x32xf32, #tpu.memory_space<vmem>>, %arg9: memref<512x10xbf16, #tpu.memory_space<vmem>>, %arg10: memref<1x10xf32, #tpu.memory_space<vmem>>, %arg11: memref<8x32xf32, #tpu.memory_space<vmem>>, %arg12: memref<8x10xf32, #tpu.memory_space<vmem>>) attributes {dimension_semantics = [], scalar_prefetch = 0 : i64, scratch_operands = 0 : i64, tpu.core_type = #tpu.core_type<tc>} {
    %c0 = arith.constant 0 : index
    %c0_0 = arith.constant 0 : index
    %0 = vector.load %arg0[%c0, %c0_0] : memref<8x256xf32, #tpu.memory_space<vmem>>, vector<8x256xf32>
    %1 = arith.truncf %0 : vector<8x256xf32> to vector<8x256xbf16>
    %c0_1 = arith.constant 0 : index
    %c0_2 = arith.constant 0 : index
    %2 = vector.load %arg1[%c0_1, %c0_2] : memref<256x512xbf16, #tpu.memory_space<vmem>>, vector<256x512xbf16>
    %cst = arith.constant dense<0.000000e+00> : vector<8x512xf32>
    %3 = tpu.matmul %1, %2, %cst {dimension_numbers = #tpu.dot_dimension_numbers<[1], [0], [0], [1], [0, 0, 1, 1], [], []>} : vector<8x256xbf16>, vector<256x512xbf16>, vector<8x512xf32> -> vector<8x512xf32>
    %c0_3 = arith.constant 0 : index
    %c0_4 = arith.constant 0 : index
    %4 = vector.load %arg2[%c0_3, %c0_4] : memref<1x512xf32, #tpu.memory_space<vmem>>, vector<1x512xf32>
    %5 = vector.broadcast %4 : vector<1x512xf32> to vector<8x512xf32>
    %6 = arith.addf %3, %5 : vector<8x512xf32>
    %cst_5 = arith.constant 0.000000e+00 : f32
    %7 = vector.broadcast %cst_5 : f32 to vector<8x512xf32>
    %8 = arith.cmpf ogt, %6, %7 : vector<8x512xf32>
    %cst_6 = arith.constant 2.000000e-01 : f32
    %9 = vector.broadcast %cst_6 : f32 to vector<8x512xf32>
    %10 = arith.mulf %9, %6 : vector<8x512xf32>
    %11 = arith.select %8, %6, %10 : vector<8x512xi1>, vector<8x512xf32>
    %12 = arith.truncf %11 : vector<8x512xf32> to vector<8x512xbf16>
    %c0_7 = arith.constant 0 : index
    %c0_8 = arith.constant 0 : index
    %13 = vector.load %arg3[%c0_7, %c0_8] : memref<512x512xbf16, #tpu.memory_space<vmem>>, vector<512x512xbf16>
    %cst_9 = arith.constant dense<0.000000e+00> : vector<8x512xf32>
    %14 = tpu.matmul %12, %13, %cst_9 {dimension_numbers = #tpu.dot_dimension_numbers<[1], [0], [0], [1], [0, 0, 1, 1], [], []>} : vector<8x512xbf16>, vector<512x512xbf16>, vector<8x512xf32> -> vector<8x512xf32>
    %c0_10 = arith.constant 0 : index
    %c0_11 = arith.constant 0 : index
    %15 = vector.load %arg4[%c0_10, %c0_11] : memref<1x512xf32, #tpu.memory_space<vmem>>, vector<1x512xf32>
    %16 = vector.broadcast %15 : vector<1x512xf32> to vector<8x512xf32>
    %17 = arith.addf %14, %16 : vector<8x512xf32>
    %cst_12 = arith.constant 1.000000e+00 : f32
    %cst_13 = arith.constant 8.000000e+00 : f32
    %18 = arith.divf %cst_12, %cst_13 : f32
    %cst_14 = arith.constant dense<0.000000e+00> : vector<512xf32>
    %19 = vector.multi_reduction <add>, %17, %cst_14 [0] : vector<8x512xf32> to vector<512xf32>
    %20 = vector.shape_cast %19 : vector<512xf32> to vector<1x512xf32>
    %21 = vector.broadcast %18 : f32 to vector<1x512xf32>
    %22 = arith.mulf %20, %21 : vector<1x512xf32>
    %23 = arith.mulf %17, %17 : vector<8x512xf32>
    %cst_15 = arith.constant dense<0.000000e+00> : vector<512xf32>
    %24 = vector.multi_reduction <add>, %23, %cst_15 [0] : vector<8x512xf32> to vector<512xf32>
    %25 = vector.shape_cast %24 : vector<512xf32> to vector<1x512xf32>
    %26 = vector.broadcast %18 : f32 to vector<1x512xf32>
    %27 = arith.mulf %25, %26 : vector<1x512xf32>
    %28 = arith.mulf %22, %22 : vector<1x512xf32>
    %29 = arith.subf %27, %28 : vector<1x512xf32>
    %cst_16 = arith.constant 0.000000e+00 : f32
    %30 = vector.broadcast %cst_16 : f32 to vector<1x512xf32>
    %31 = arith.maximumf %29, %30 : vector<1x512xf32>
    %32 = vector.broadcast %22 : vector<1x512xf32> to vector<8x512xf32>
    %33 = arith.subf %17, %32 : vector<8x512xf32>
    %cst_17 = arith.constant 9.99999974E-6 : f32
    %34 = vector.broadcast %cst_17 : f32 to vector<1x512xf32>
    %35 = arith.addf %31, %34 : vector<1x512xf32>
    %36 = math.rsqrt %35 : vector<1x512xf32>
    %37 = vector.broadcast %36 : vector<1x512xf32> to vector<8x512xf32>
    %38 = arith.mulf %33, %37 : vector<8x512xf32>
    %c0_18 = arith.constant 0 : index
    %c0_19 = arith.constant 0 : index
    %39 = vector.load %arg5[%c0_18, %c0_19] : memref<1x512xf32, #tpu.memory_space<vmem>>, vector<1x512xf32>
    %40 = vector.broadcast %39 : vector<1x512xf32> to vector<8x512xf32>
    %41 = arith.mulf %38, %40 : vector<8x512xf32>
    %c0_20 = arith.constant 0 : index
    %c0_21 = arith.constant 0 : index
    %42 = vector.load %arg6[%c0_20, %c0_21] : memref<1x512xf32, #tpu.memory_space<vmem>>, vector<1x512xf32>
    %43 = vector.broadcast %42 : vector<1x512xf32> to vector<8x512xf32>
    %44 = arith.addf %41, %43 : vector<8x512xf32>
    %cst_22 = arith.constant 0.000000e+00 : f32
    %45 = vector.broadcast %cst_22 : f32 to vector<8x512xf32>
    %46 = arith.cmpf ogt, %44, %45 : vector<8x512xf32>
    %cst_23 = arith.constant 2.000000e-01 : f32
    %47 = vector.broadcast %cst_23 : f32 to vector<8x512xf32>
    %48 = arith.mulf %47, %44 : vector<8x512xf32>
    %49 = arith.select %46, %44, %48 : vector<8x512xi1>, vector<8x512xf32>
    %50 = arith.truncf %49 : vector<8x512xf32> to vector<8x512xbf16>
    %c0_24 = arith.constant 0 : index
    %c0_25 = arith.constant 0 : index
    %51 = vector.load %arg7[%c0_24, %c0_25] : memref<512x32xbf16, #tpu.memory_space<vmem>>, vector<512x32xbf16>
    %cst_26 = arith.constant dense<0.000000e+00> : vector<8x32xf32>
    %52 = tpu.matmul %50, %51, %cst_26 {dimension_numbers = #tpu.dot_dimension_numbers<[1], [0], [0], [1], [0, 0, 1, 1], [], []>} : vector<8x512xbf16>, vector<512x32xbf16>, vector<8x32xf32> -> vector<8x32xf32>
    %c0_27 = arith.constant 0 : index
    %c0_28 = arith.constant 0 : index
    %53 = vector.load %arg8[%c0_27, %c0_28] : memref<1x32xf32, #tpu.memory_space<vmem>>, vector<1x32xf32>
    %54 = vector.broadcast %53 : vector<1x32xf32> to vector<8x32xf32>
    %55 = arith.addf %52, %54 : vector<8x32xf32>
    %c0_29 = arith.constant 0 : index
    %c0_30 = arith.constant 0 : index
    %56 = vector.load %arg11[%c0_29, %c0_30] : memref<8x32xf32, #tpu.memory_space<vmem>>, vector<8x32xf32>
    tpu.vector_store %arg11[%c0_29, %c0_30], %55 {strides = array<i32>} : memref<8x32xf32, #tpu.memory_space<vmem>>, vector<8x32xf32>,
    %c0_31 = arith.constant 0 : index
    %c0_32 = arith.constant 0 : index
    %57 = vector.load %arg9[%c0_31, %c0_32] : memref<512x10xbf16, #tpu.memory_space<vmem>>, vector<512x10xbf16>
    %cst_33 = arith.constant dense<0.000000e+00> : vector<8x10xf32>
    %58 = tpu.matmul %50, %57, %cst_33 {dimension_numbers = #tpu.dot_dimension_numbers<[1], [0], [0], [1], [0, 0, 1, 1], [], []>} : vector<8x512xbf16>, vector<512x10xbf16>, vector<8x10xf32> -> vector<8x10xf32>
    %c0_34 = arith.constant 0 : index
    %c0_35 = arith.constant 0 : index
    %59 = vector.load %arg10[%c0_34, %c0_35] : memref<1x10xf32, #tpu.memory_space<vmem>>, vector<1x10xf32>
    %60 = vector.broadcast %59 : vector<1x10xf32> to vector<8x10xf32>
    %61 = arith.addf %58, %60 : vector<8x10xf32>
    %cst_36 = arith.constant dense<0xFF800000> : vector<8xf32>
    %62 = vector.multi_reduction <maximumf>, %61, %cst_36 [1] : vector<8x10xf32> to vector<8xf32>
    %63 = vector.shape_cast %62 : vector<8xf32> to vector<8x1xf32>
    %64 = vector.broadcast %63 : vector<8x1xf32> to vector<8x10xf32>
    %65 = arith.subf %61, %64 : vector<8x10xf32>
    %66 = math.exp %65 : vector<8x10xf32>
    %cst_37 = arith.constant dense<0.000000e+00> : vector<8xf32>
    %67 = vector.multi_reduction <add>, %66, %cst_37 [1] : vector<8x10xf32> to vector<8xf32>
    %68 = vector.shape_cast %67 : vector<8xf32> to vector<8x1xf32>
    %69 = vector.broadcast %68 : vector<8x1xf32> to vector<8x10xf32>
    %70 = arith.divf %66, %69 : vector<8x10xf32>
    %c0_38 = arith.constant 0 : index
    %c0_39 = arith.constant 0 : index
    %71 = vector.load %arg12[%c0_38, %c0_39] : memref<8x10xf32, #tpu.memory_space<vmem>>, vector<8x10xf32>
    tpu.vector_store %arg12[%c0_38, %c0_39], %70 {strides = array<i32>} : memref<8x10xf32, #tpu.memory_space<vmem>>, vector<8x10xf32>,
    return
  }
}

</mosaic_0001>

<bundles_post_ra>
// kernel: tpu_custom_call.1
= control target key start
LH: loop header
LB: loop body
LE: loop exit
PB: predicated region body
PF: predicated region fallthrough
CT: control target
= control target key end

     0   :  { %18 = vsyncpa [#allocation3], 0  ;;  %s3744_s0 = inlined_call_operand.vmem [shape: f32[8,256], index: 0, kind: input, shape index: {}]   ;;  %s3745_s1 = inlined_call_operand.vmem [shape: bf16[256,512], index: 1, kind: input, shape index: {}]   ;;  %s3746_s2 = inlined_call_operand.vmem [shape: f32[1,512], index: 2, kind: input, shape index: {}]   ;;  %s3747_s3 = inlined_call_operand.hbm [shape: bf16[512,512], index: 3, kind: input, shape index: {}]   ;;  %s3748_s4 = inlined_call_operand.vmem [shape: f32[1,512], index: 4, kind: input, shape index: {}]   ;;  %s3749_s5 = inlined_call_operand.vmem [shape: f32[1,512], index: 5, kind: input, shape index: {}]   ;;  %s3750_s6 = inlined_call_operand.vmem [shape: f32[1,512], index: 6, kind: input, shape index: {}]   ;;  %s3751_s7 = inlined_call_operand.vmem [shape: bf16[512,32], index: 7, kind: input, shape index: {}]   ;;  %s3752_s8 = inlined_call_operand.vmem [shape: f32[1,32], index: 8, kind: input, shape index: {}]   ;;  %s3753_s9 = inlined_call_operand.vmem [shape: bf16[512,10], index: 9, kind: input, shape index: {}]   ;;  %s3754_s10 = inlined_call_operand.vmem [shape: f32[1,10], index: 10, kind: input, shape index: {}]   ;;  %s3755_s11 = inlined_call_operand.hbm [shape: f32[8,32], index: 11, kind: output, shape index: {0}]   ;;  %s3756_s12 = inlined_call_operand.hbm [shape: f32[8,10], index: 12, kind: output, shape index: {1}]  }
   0x1   :  { %19 = vsyncpa [#allocation4], 0 }
   0x2   :  { %20 = vsyncpa [#allocation7], 0  ;;  %s3186_s21 = smov [#allocation2]  }
   0x3   :  { %s32_s22 = sshll.u32 %s3186_s21, 4  ;;  %s33_s22 = int_to_ptr.vmem [resolvable:$true] %s32_s22 }
   0x4   :  { %s3128_s23 = scalar_lea.vmem %s33_s22, 16384  ;;  %p3133_p1 = scmp.lt.s32.totalorder %s33_s22, %s33_s22 }
   0x5   :  { %p3129_p0 = scmp.ne.s32.totalorder %s33_s22, %s3128_s23  ;;  %p3134_p2 = scmp.lt.s32.totalorder %s3128_s23, %s3128_s23 }
   0x7   :  { %p3135_p3 = por %p3134_p2, %p3133_p1 }
   0x9   :  { %p3136_p4 = pnand %p3135_p3, %p3129_p0 }
   0xb   :  { %3139 = shalt.err (!%p3136_p4)
}
   0xc   :  { %s3187_s24 = smov 256   ;;  %s3188_s25 = smov 16  }
   0xd   :  { %38 = dma.hbm_to_vmem [thread:$0]  %s3747_s3, 16384, %s33_s22, [#allocation3], %s3187_s24, %s3187_s24, %s3188_s25  }
   0xe   :  { %3180 = dma.done.wait [#allocation3], 16384  }
   0xf   :  { %3181 = vsyncadd [#allocation3], 4294950912  ;;  %v2756_v0 = vld [vmem:[%s3745_s1 + $0xe4] ss:$16 sps:$4 sm:$0xff]   ;;  %v2758_v1 = vld [vmem:[%s3745_s1 + $0xec] ss:$16 sps:$4 sm:$0xff]  }
  0x10   :  { %467 = vmatprep.subr.bf16.mxu0 %v2756_v0  ;;  %v2760_v2 = vld [vmem:[%s3745_s1 + $0xe0] ss:$16 sps:$4 sm:$0xff]   ;;  %v2761_v3 = vld [vmem:[%s3745_s1 + $0xe8] ss:$16 sps:$4 sm:$0xff]   ;;  %508 = vmatprep.subr.bf16.mxu1 %v2758_v1  ;;  %v2762_v4 = vld [vmem:[%s3745_s1 + $0xc4] ss:$16 sps:$4 sm:$0xff]  }
  0x11   :  { %468 = vmatpush1.bf16.msra.mxu0 %v2760_v2  ;;  %509 = vmatpush1.bf16.msra.mxu1 %v2761_v3  ;;  %v2764_v5 = vld [vmem:[%s3745_s1 + $0xcc] ss:$16 sps:$4 sm:$0xff]   ;;  %v2766_v6 = vld [vmem:[%s3745_s1 + $0xc0] ss:$16 sps:$4 sm:$0xff]   ;;  %v2767_v7 = vld [vmem:[%s3745_s1 + $0xc8] ss:$16 sps:$4 sm:$0xff]  }
  0x12   :  { %469 = vmatprep.subr.bf16.mxu0 %v2762_v4  ;;  %510 = vmatprep.subr.bf16.mxu1 %v2764_v5  ;;  %v2768_v8 = vld [vmem:[%s3745_s1 + $0xa4] ss:$16 sps:$4 sm:$0xff]   ;;  %v2770_v9 = vld [vmem:[%s3745_s1 + $0xac] ss:$16 sps:$4 sm:$0xff]   ;;  %v2772_v10 = vld [vmem:[%s3745_s1 + $0xa0] ss:$16 sps:$4 sm:$0xff]  }
  0x13   :  { %v2773_v11 = vld [vmem:[%s3745_s1 + $0xa8] ss:$16 sps:$4 sm:$0xff]   ;;  %v2774_v12 = vld [vmem:[%s3745_s1 + $0x84] ss:$16 sps:$4 sm:$0xff]   ;;  %v2776_v13 = vld [vmem:[%s3745_s1 + $0x8c] ss:$16 sps:$4 sm:$0xff]  }
  0x14   :  { %v2778_v14 = vld [vmem:[%s3745_s1 + $0x80] ss:$16 sps:$4 sm:$0xff]   ;;  %v2779_v15 = vld [vmem:[%s3745_s1 + $0x88] ss:$16 sps:$4 sm:$0xff]   ;;  %v2780_v16 = vld [vmem:[%s3745_s1 + $0x64] ss:$16 sps:$4 sm:$0xff]  }
  0x15   :  { %470 = vmatpush1.bf16.msra.mxu0 %v2766_v6  ;;  %511 = vmatpush1.bf16.msra.mxu1 %v2767_v7  ;;  %v2782_v17 = vld [vmem:[%s3745_s1 + $0x6c] ss:$16 sps:$4 sm:$0xff]   ;;  %v2784_v18 = vld [vmem:[%s3745_s1 + $0x60] ss:$16 sps:$4 sm:$0xff]   ;;  %v2785_v19 = vld [vmem:[%s3745_s1 + $0x68] ss:$16 sps:$4 sm:$0xff]  }
  0x16   :  { %471 = vmatprep.subr.bf16.mxu0 %v2768_v8  ;;  %512 = vmatprep.subr.bf16.mxu1 %v2770_v9  ;;  %v2786_v20 = vld [vmem:[%s3745_s1 + $0x44] ss:$16 sps:$4 sm:$0xff]   ;;  %v2788_v21 = vld [vmem:[%s3745_s1 + $0x4c] ss:$16 sps:$4 sm:$0xff]   ;;  %v2790_v22 = vld [vmem:[%s3745_s1 + $0x40] ss:$16 sps:$4 sm:$0xff]  }
  0x17   :  { %v2791_v23 = vld [vmem:[%s3745_s1 + $0x48] ss:$16 sps:$4 sm:$0xff]   ;;  %v2792_v24 = vld [vmem:[%s3745_s1 + $0x24] ss:$16 sps:$4 sm:$0xff]   ;;  %v2794_v25 = vld [vmem:[%s3745_s1 + $0x2c] ss:$16 sps:$4 sm:$0xff]  }
  0x18   :  { %v2796_v26 = vld [vmem:[%s3745_s1 + $0x20] ss:$16 sps:$4 sm:$0xff]   ;;  %v2797_v27 = vld [vmem:[%s3745_s1 + $0x28] ss:$16 sps:$4 sm:$0xff]   ;;  %v2798_v28 = vld [vmem:[%s3745_s1 + $0x4] ss:$16 sps:$4 sm:$0xff]  }
  0x19   :  { %472 = vmatpush1.bf16.msra.mxu0 %v2772_v10  ;;  %513 = vmatpush1.bf16.msra.mxu1 %v2773_v11  ;;  %v2800_v29 = vld [vmem:[%s3745_s1 + $0xc] ss:$16 sps:$4 sm:$0xff]   ;;  %v2802_v30 = vld [vmem:[%s3745_s1] ss:$16 sps:$4 sm:$0xff]   ;;  %v2803_v31 = vld [vmem:[%s3745_s1 + $0x8] ss:$16 sps:$4 sm:$0xff]  }
  0x1a   :  { %473 = vmatprep.subr.bf16.mxu0 %v2774_v12  ;;  %514 = vmatprep.subr.bf16.mxu1 %v2776_v13  ;;  %v2804_v32 = vld [vmem:[%s3745_s1 + $0x1e4] ss:$16 sps:$4 sm:$0xff]   ;;  %v2806_v33 = vld [vmem:[%s3745_s1 + $0x1ec] ss:$16 sps:$4 sm:$0xff]   ;;  %v2808_v34 = vld [vmem:[%s3745_s1 + $0x1e0] ss:$16 sps:$4 sm:$0xff]  }
  0x1b   :  { %v2809_v35 = vld [vmem:[%s3745_s1 + $0x1e8] ss:$16 sps:$4 sm:$0xff]   ;;  %v2810_v36 = vld [vmem:[%s3745_s1 + $0x1c4] ss:$16 sps:$4 sm:$0xff]   ;;  %v2812_v37 = vld [vmem:[%s3745_s1 + $0x1cc] ss:$16 sps:$4 sm:$0xff]  }
  0x1c   :  { %v2814_v38 = vld [vmem:[%s3745_s1 + $0x1c0] ss:$16 sps:$4 sm:$0xff]   ;;  %v2815_v39 = vld [vmem:[%s3745_s1 + $0x1c8] ss:$16 sps:$4 sm:$0xff]   ;;  %v2816_v40 = vld [vmem:[%s3745_s1 + $0x1a4] ss:$16 sps:$4 sm:$0xff]  }
  0x1d   :  { %474 = vmatpush1.bf16.msra.mxu0 %v2778_v14  ;;  %515 = vmatpush1.bf16.msra.mxu1 %v2779_v15  ;;  %v2818_v41 = vld [vmem:[%s3745_s1 + $0x1ac] ss:$16 sps:$4 sm:$0xff]   ;;  %v2820_v42 = vld [vmem:[%s3745_s1 + $0x1a0] ss:$16 sps:$4 sm:$0xff]   ;;  %v2821_v43 = vld [vmem:[%s3745_s1 + $0x1a8] ss:$16 sps:$4 sm:$0xff]  }
  0x1e   :  { %475 = vmatprep.subr.bf16.mxu0 %v2780_v16  ;;  %516 = vmatprep.subr.bf16.mxu1 %v2782_v17  ;;  %v2822_v44 = vld [vmem:[%s3745_s1 + $0x184] ss:$16 sps:$4 sm:$0xff]   ;;  %v2824_v45 = vld [vmem:[%s3745_s1 + $0x18c] ss:$16 sps:$4 sm:$0xff]   ;;  %v2826_v48 = vld [vmem:[%s3745_s1 + $0x180] ss:$16 sps:$4 sm:$0xff]  }
  0x1f   :  { %v58_v46 = vld [vmem:[%s3744_s0 + $0x8] sm:$0xff]  ;;  %v2828_v50 = vld [vmem:[%s3745_s1 + $0x164] ss:$16 sps:$4 sm:$0xff]   ;;  %v2832_v52 = vld [vmem:[%s3745_s1 + $0x160] ss:$16 sps:$4 sm:$0xff]   ;;  %vm2018_vm8 = vcmask 261120  }
  0x20   :  { %v60_v47 = vpack.c.bf16 %v58_v46, %v58_v46  ;;  %v2827_v49 = vld [vmem:[%s3745_s1 + $0x188] ss:$16 sps:$4 sm:$0xff]   ;;  %v2830_v51 = vld [vmem:[%s3745_s1 + $0x16c] ss:$16 sps:$4 sm:$0xff]   ;;  %v2834_v54 = vld [vmem:[%s3745_s1 + $0x144] ss:$16 sps:$4 sm:$0xff]  }
  0x21   :  { %476 = vmatpush1.bf16.msra.mxu0 %v2784_v18  ;;  %517 = vmatpush1.bf16.msra.mxu1 %v2785_v19  ;;  %v2833_v53 = vld [vmem:[%s3745_s1 + $0x168] ss:$16 sps:$4 sm:$0xff]   ;;  %v2836_v55 = vld [vmem:[%s3745_s1 + $0x14c] ss:$16 sps:$4 sm:$0xff]   ;;  %v2838_v56 = vld [vmem:[%s3745_s1 + $0x140] ss:$16 sps:$4 sm:$0xff]  }
  0x22   :  { %477 = vmatprep.subr.bf16.mxu0 %v2786_v20  ;;  %518 = vmatprep.subr.bf16.mxu1 %v2788_v21  ;;  %v2839_v57 = vld [vmem:[%s3745_s1 + $0x148] ss:$16 sps:$4 sm:$0xff]   ;;  %v2840_v58 = vld [vmem:[%s3745_s1 + $0x124] ss:$16 sps:$4 sm:$0xff]   ;;  %v2842_v59 = vld [vmem:[%s3745_s1 + $0x12c] ss:$16 sps:$4 sm:$0xff]  }
  0x23   :  { %499 = vmatprep.mubr.bf16.mxu0 %v60_v47  ;;  %540 = vmatprep.mubr.bf16.mxu1 %v60_v47  ;;  %v2844_v60 = vld [vmem:[%s3745_s1 + $0x120] ss:$16 sps:$4 sm:$0xff]   ;;  %v2845_v61 = vld [vmem:[%s3745_s1 + $0x128] ss:$16 sps:$4 sm:$0xff]   ;;  %v2846_v62 = vld [vmem:[%s3745_s1 + $0x104] ss:$16 sps:$4 sm:$0xff]  }
  0x24   :  { %v2848_v63 = vld [vmem:[%s3745_s1 + $0x10c] ss:$16 sps:$4 sm:$0xff]   ;;  %v2850_v0 = vld [vmem:[%s3745_s1 + $0x100] ss:$16 sps:$4 sm:$0xff]   ;;  %v2851_v1 = vld [vmem:[%s3745_s1 + $0x108] ss:$16 sps:$4 sm:$0xff]  }
  0x25   :  { %478 = vmatpush1.bf16.msra.mxu0 %v2790_v22  ;;  %519 = vmatpush1.bf16.msra.mxu1 %v2791_v23  ;;  %v57_v2 = vld [vmem:[%s3744_s0] sm:$0xff]  ;;  %vm2363_vm9 = vcmask 80896  }
  0x26   :  { %479 = vmatprep.subr.bf16.mxu0 %v2792_v24  ;;  %520 = vmatprep.subr.bf16.mxu1 %v2794_v25  ;;  %v2854_v3 = vld [vmem:[#allocation2 + $0xe4] ss:$16 sps:$4 sm:$0xff]   ;;  %v59_v5 = vpack.c.bf16 %v57_v2, %v57_v2  ;;  %v2852_v6 = vld [vmem:[#allocation2 + $0xe0] ss:$16 sps:$4 sm:$0xff]  }
  0x27   :  { %v2857_v4 = vld [vmem:[#allocation2 + $0x2e4] ss:$16 sps:$4 sm:$0xff]   ;;  %v2855_v7 = vld [vmem:[#allocation2 + $0x2e0] ss:$16 sps:$4 sm:$0xff]  }
  0x28   :  { %v2860_v8 = vld [vmem:[#allocation2 + $0xc4] ss:$16 sps:$4 sm:$0xff]   ;;  %v2858_v10 = vld [vmem:[#allocation2 + $0xc0] ss:$16 sps:$4 sm:$0xff]  }
  0x29   :  { %480 = vmatpush1.bf16.msra.mxu0 %v2796_v26  ;;  %521 = vmatpush1.bf16.msra.mxu1 %v2797_v27  ;;  %v2863_v9 = vld [vmem:[#allocation2 + $0x2c4] ss:$16 sps:$4 sm:$0xff]   ;;  %v2861_v11 = vld [vmem:[#allocation2 + $0x2c0] ss:$16 sps:$4 sm:$0xff]  }
  0x2a   :  { %481 = vmatprep.subr.bf16.mxu0 %v2798_v28  ;;  %522 = vmatprep.subr.bf16.mxu1 %v2800_v29  ;;  %v2866_v12 = vld [vmem:[#allocation2 + $0xa4] ss:$16 sps:$4 sm:$0xff]   ;;  %v2864_v14 = vld [vmem:[#allocation2 + $0xa0] ss:$16 sps:$4 sm:$0xff]  }
  0x2b   :  { %v2869_v13 = vld [vmem:[#allocation2 + $0x2a4] ss:$16 sps:$4 sm:$0xff]   ;;  %v2867_v15 = vld [vmem:[#allocation2 + $0x2a0] ss:$16 sps:$4 sm:$0xff]  }
  0x2c   :  { %v2872_v16 = vld [vmem:[#allocation2 + $0x84] ss:$16 sps:$4 sm:$0xff]   ;;  %v2870_v18 = vld [vmem:[#allocation2 + $0x80] ss:$16 sps:$4 sm:$0xff]  }
  0x2d   :  { %482 = vmatpush1.bf16.msra.mxu0 %v2802_v30  ;;  %523 = vmatpush1.bf16.msra.mxu1 %v2803_v31  ;;  %v2875_v17 = vld [vmem:[#allocation2 + $0x284] ss:$16 sps:$4 sm:$0xff]   ;;  %v2873_v19 = vld [vmem:[#allocation2 + $0x280] ss:$16 sps:$4 sm:$0xff]  }
  0x2e   :  { %483 = vmatprep.subr.bf16.mxu0 %v2804_v32  ;;  %524 = vmatprep.subr.bf16.mxu1 %v2806_v33  ;;  %v2878_v20 = vld [vmem:[#allocation2 + $0x64] ss:$16 sps:$4 sm:$0xff]   ;;  %v2876_v22 = vld [vmem:[#allocation2 + $0x60] ss:$16 sps:$4 sm:$0xff]  }
  0x2f   :  { %v2881_v21 = vld [vmem:[#allocation2 + $0x264] ss:$16 sps:$4 sm:$0xff]   ;;  %v2879_v23 = vld [vmem:[#allocation2 + $0x260] ss:$16 sps:$4 sm:$0xff]  }
  0x30   :  { %v2884_v24 = vld [vmem:[#allocation2 + $0x44] ss:$16 sps:$4 sm:$0xff]   ;;  %v2882_v26 = vld [vmem:[#allocation2 + $0x40] ss:$16 sps:$4 sm:$0xff]  }
  0x31   :  { %484 = vmatpush2.bf16.msra.mxu0 %v2808_v34  ;;  %525 = vmatpush2.bf16.msra.mxu1 %v2809_v35  ;;  %v2887_v25 = vld [vmem:[#allocation2 + $0x244] ss:$16 sps:$4 sm:$0xff]   ;;  %v2885_v27 = vld [vmem:[#allocation2 + $0x240] ss:$16 sps:$4 sm:$0xff]  }
  0x32   :  { %485 = vmatprep.subr.bf16.mxu0 %v2810_v36  ;;  %526 = vmatprep.subr.bf16.mxu1 %v2812_v37  ;;  %v2890_v28 = vld [vmem:[#allocation2 + $0x24] ss:$16 sps:$4 sm:$0xff]   ;;  %v2888_v30 = vld [vmem:[#allocation2 + $0x20] ss:$16 sps:$4 sm:$0xff]  }
  0x33   :  { %v2893_v29 = vld [vmem:[#allocation2 + $0x224] ss:$16 sps:$4 sm:$0xff]   ;;  %v2891_v31 = vld [vmem:[#allocation2 + $0x220] ss:$16 sps:$4 sm:$0xff]  }
  0x34   :  { %v2896_v32 = vld [vmem:[#allocation2 + $0x4] ss:$16 sps:$4 sm:$0xff]   ;;  %v2894_v34 = vld [vmem:[#allocation2] ss:$16 sps:$4 sm:$0xff]  }
  0x35   :  { %486 = vmatpush2.bf16.msra.mxu0 %v2814_v38  ;;  %527 = vmatpush2.bf16.msra.mxu1 %v2815_v39  ;;  %v2899_v33 = vld [vmem:[#allocation2 + $0x204] ss:$16 sps:$4 sm:$0xff]   ;;  %v2897_v35 = vld [vmem:[#allocation2 + $0x200] ss:$16 sps:$4 sm:$0xff]  }
  0x36   :  { %487 = vmatprep.subr.bf16.mxu0 %v2816_v40  ;;  %528 = vmatprep.subr.bf16.mxu1 %v2818_v41  ;;  %v2902_v36 = vld [vmem:[#allocation2 + $0x1e4] ss:$16 sps:$4 sm:$0xff]   ;;  %v2900_v38 = vld [vmem:[#allocation2 + $0x1e0] ss:$16 sps:$4 sm:$0xff]  }
  0x37   :  { %v2905_v37 = vld [vmem:[#allocation2 + $0x3e4] ss:$16 sps:$4 sm:$0xff]   ;;  %v2903_v39 = vld [vmem:[#allocation2 + $0x3e0] ss:$16 sps:$4 sm:$0xff]  }
  0x38   :  { %v2908_v40 = vld [vmem:[#allocation2 + $0x1c4] ss:$16 sps:$4 sm:$0xff]   ;;  %v2912_v46 = vld [vmem:[#allocation2 + $0x1a0] ss:$16 sps:$4 sm:$0xff]  }
  0x39   :  { %488 = vmatpush2.bf16.msra.mxu0 %v2820_v42  ;;  %529 = vmatpush2.bf16.msra.mxu1 %v2821_v43  ;;  %v2911_v41 = vld [vmem:[#allocation2 + $0x3c4] ss:$16 sps:$4 sm:$0xff]   ;;  %v2906_v42 = vld [vmem:[#allocation2 + $0x1c0] ss:$16 sps:$4 sm:$0xff]  }
  0x3a   :  { %489 = vmatprep.subr.bf16.mxu0 %v2822_v44  ;;  %530 = vmatprep.subr.bf16.mxu1 %v2824_v45  ;;  %v2909_v43 = vld [vmem:[#allocation2 + $0x3c0] ss:$16 sps:$4 sm:$0xff]   ;;  %v2914_v44 = vld [vmem:[#allocation2 + $0x1a4] ss:$16 sps:$4 sm:$0xff]  }
  0x3b   :  { %v2917_v45 = vld [vmem:[#allocation2 + $0x3a4] ss:$16 sps:$4 sm:$0xff]   ;;  %v2915_v47 = vld [vmem:[#allocation2 + $0x3a0] ss:$16 sps:$4 sm:$0xff]  }
  0x3c   :  { %v2942_v2 = vld [vmem:[#allocation2 + $0x100] ss:$16 sps:$4 sm:$0xff]  }
  0x3d   :  { %490 = vmatpush2.bf16.msra.mxu0 %v2826_v48  ;;  %531 = vmatpush2.bf16.msra.mxu1 %v2827_v49  ;;  %v2920_v48 = vld [vmem:[#allocation2 + $0x184] ss:$16 sps:$4 sm:$0xff]  }
  0x3e   :  { %491 = vmatprep.subr.bf16.mxu0 %v2828_v50  ;;  %532 = vmatprep.subr.bf16.mxu1 %v2830_v51  ;;  %v2923_v49 = vld [vmem:[#allocation2 + $0x384] ss:$16 sps:$4 sm:$0xff]   ;;  %v2918_v50 = vld [vmem:[#allocation2 + $0x180] ss:$16 sps:$4 sm:$0xff]  }
  0x3f   :  { %v2921_v51 = vld [vmem:[#allocation2 + $0x380] ss:$16 sps:$4 sm:$0xff]  }
  0x41   :  { %492 = vmatpush2.bf16.msra.mxu0 %v2832_v52  ;;  %533 = vmatpush2.bf16.msra.mxu1 %v2833_v53  ;;  %v2926_v52 = vld [vmem:[#allocation2 + $0x164] ss:$16 sps:$4 sm:$0xff]  }
  0x42   :  { %493 = vmatprep.subr.bf16.mxu0 %v2834_v54  ;;  %534 = vmatprep.subr.bf16.mxu1 %v2836_v55  ;;  %v2929_v53 = vld [vmem:[#allocation2 + $0x364] ss:$16 sps:$4 sm:$0xff]   ;;  %v2924_v54 = vld [vmem:[#allocation2 + $0x160] ss:$16 sps:$4 sm:$0xff]  }
  0x43   :  { %v2927_v55 = vld [vmem:[#allocation2 + $0x360] ss:$16 sps:$4 sm:$0xff]  }
  0x45   :  { %494 = vmatpush2.bf16.msra.mxu0 %v2838_v56  ;;  %535 = vmatpush2.bf16.msra.mxu1 %v2839_v57  ;;  %v2932_v56 = vld [vmem:[#allocation2 + $0x144] ss:$16 sps:$4 sm:$0xff]  }
  0x46   :  { %495 = vmatprep.subr.bf16.mxu0 %v2840_v58  ;;  %536 = vmatprep.subr.bf16.mxu1 %v2842_v59  ;;  %v2935_v57 = vld [vmem:[#allocation2 + $0x344] ss:$16 sps:$4 sm:$0xff]   ;;  %v2930_v58 = vld [vmem:[#allocation2 + $0x140] ss:$16 sps:$4 sm:$0xff]  }
  0x47   :  { %v2933_v59 = vld [vmem:[#allocation2 + $0x340] ss:$16 sps:$4 sm:$0xff]  }
  0x49   :  { %496 = vmatpush2.bf16.msra.mxu0 %v2844_v60  ;;  %537 = vmatpush2.bf16.msra.mxu1 %v2845_v61  ;;  %v2938_v60 = vld [vmem:[#allocation2 + $0x124] ss:$16 sps:$4 sm:$0xff]  }
  0x4a   :  { %497 = vmatprep.subr.bf16.mxu0 %v2846_v62  ;;  %538 = vmatprep.subr.bf16.mxu1 %v2848_v63  ;;  %v2941_v61 = vld [vmem:[#allocation2 + $0x324] ss:$16 sps:$4 sm:$0xff]   ;;  %v2936_v62 = vld [vmem:[#allocation2 + $0x120] ss:$16 sps:$4 sm:$0xff]  }
  0x4b   :  { %v2939_v63 = vld [vmem:[#allocation2 + $0x320] ss:$16 sps:$4 sm:$0xff]  }
  0x4d   :  { %498 = vmatpush2.bf16.msra.mxu0 %v2850_v0  ;;  %539 = vmatpush2.bf16.msra.mxu1 %v2851_v1  ;;  %v2944_v0 = vld [vmem:[#allocation2 + $0x104] ss:$16 sps:$4 sm:$0xff]  }
  0x4e   :  { %1355 = vmatprep.subr.bf16.mxu0 %v2854_v3  ;;  %1396 = vmatprep.subr.bf16.mxu1 %v2857_v4  ;;  %v2947_v1 = vld [vmem:[#allocation2 + $0x304] ss:$16 sps:$4 sm:$0xff]   ;;  %v2945_v3 = vld [vmem:[#allocation2 + $0x300] ss:$16 sps:$4 sm:$0xff]   ;;  %v2950_v4 = vld [vmem:[#allocation2 + $0xec] ss:$16 sps:$4 sm:$0xff]  }
  0x50   :  { %500 = vmatmul.mubr.bf16.vlgmr.msra.gmra.mxu0 %v59_v5  ;;  %541 = vmatmul.mubr.bf16.vlgmr.msra.gmra.mxu1 %v59_v5  ;;  %v2953_v5 = vld [vmem:[#allocation2 + $0x2ec] ss:$16 sps:$4 sm:$0xff]  }
  0x51   :  { %1356 = vmatpush1.bf16.msra.mxu0 %v2852_v6  ;;  %1397 = vmatpush1.bf16.msra.mxu1 %v2855_v7  ;;  %v127_v6 = vlaneseq }
  0x52   :  { %1357 = vmatprep.subr.bf16.mxu0 %v2860_v8  ;;  %1398 = vmatprep.subr.bf16.mxu1 %v2863_v9 }
  0x53   :  { %v128_v7 = vshrl.u32 %v127_v6, 7  ;;  %v2993_v6 = vld [vmem:[#allocation2 + $0x208] ss:$16 sps:$4 sm:$0xff]  }
  0x55   :  { %1358 = vmatpush1.bf16.msra.mxu0 %v2858_v10  ;;  %1399 = vmatpush1.bf16.msra.mxu1 %v2861_v11  ;;  %v3457_v8 = vsub.s32 0, %v128_v7  ;;  %v3459_v9 = vsub.s32 2, %v128_v7  ;;  %v125_v10 = vld [vmem:[%s3746_s2] sm:$0xf]  ;;  %v3464_v11 = vsub.s32 1, %v128_v7 }
  0x56   :  { %1359 = vmatprep.subr.bf16.mxu0 %v2866_v12  ;;  %1400 = vmatprep.subr.bf16.mxu1 %v2869_v13  ;;  %v3466_v12 = vsub.s32 3, %v128_v7  ;;  %v2998_v7 = vld [vmem:[#allocation2 + $0x1ec] ss:$16 sps:$4 sm:$0xff]  }
  0x57   :  { %v130_v13 = vrot.slane %v125_v10, %v3457_v8 }
  0x59   :  { %1360 = vmatpush1.bf16.msra.mxu0 %v2864_v14  ;;  %1401 = vmatpush1.bf16.msra.mxu1 %v2867_v15  ;;  %v138_v14 = vrot.slane %v125_v10, %v3459_v9 }
  0x5a   :  { %1361 = vmatprep.subr.bf16.mxu0 %v2872_v16  ;;  %1402 = vmatprep.subr.bf16.mxu1 %v2875_v17  ;;  %v134_v17 = vrot.slane %v125_v10, %v3464_v11 }
  0x5d   :  { %1362 = vmatpush1.bf16.msra.mxu0 %v2870_v18  ;;  %1403 = vmatpush1.bf16.msra.mxu1 %v2873_v19  ;;  %v142_v18 = vrot.slane %v125_v10, %v3466_v12  ;;  %v3001_v10 = vld [vmem:[#allocation2 + $0x3ec] ss:$16 sps:$4 sm:$0xff]  }
  0x5e   :  { %1363 = vmatprep.subr.bf16.mxu0 %v2878_v20  ;;  %1404 = vmatprep.subr.bf16.mxu1 %v2881_v21 }
  0x61   :  { %1364 = vmatpush1.bf16.msra.mxu0 %v2876_v22  ;;  %1405 = vmatpush1.bf16.msra.mxu1 %v2879_v23 }
  0x62   :  { %1365 = vmatprep.subr.bf16.mxu0 %v2884_v24  ;;  %1406 = vmatprep.subr.bf16.mxu1 %v2887_v25 }
  0x65   :  { %1366 = vmatpush1.bf16.msra.mxu0 %v2882_v26  ;;  %1407 = vmatpush1.bf16.msra.mxu1 %v2885_v27 }
  0x66   :  { %1367 = vmatprep.subr.bf16.mxu0 %v2890_v28  ;;  %1408 = vmatprep.subr.bf16.mxu1 %v2893_v29 }
  0x69   :  { %1368 = vmatpush1.bf16.msra.mxu0 %v2888_v30  ;;  %1409 = vmatpush1.bf16.msra.mxu1 %v2891_v31 }
  0x6a   :  { %1369 = vmatprep.subr.bf16.mxu0 %v2896_v32  ;;  %1410 = vmatprep.subr.bf16.mxu1 %v2899_v33 }
  0x6d   :  { %1370 = vmatpush1.bf16.msra.mxu0 %v2894_v34  ;;  %1411 = vmatpush1.bf16.msra.mxu1 %v2897_v35 }
  0x6e   :  { %1371 = vmatprep.subr.bf16.mxu0 %v2902_v36  ;;  %1412 = vmatprep.subr.bf16.mxu1 %v2905_v37 }
  0x71   :  { %1372 = vmatpush2.bf16.msra.mxu0 %v2900_v38  ;;  %1413 = vmatpush2.bf16.msra.mxu1 %v2903_v39  ;;  %v2948_v38 = vld [vmem:[#allocation2 + $0xe8] ss:$16 sps:$4 sm:$0xff]  }
  0x72   :  { %1373 = vmatprep.subr.bf16.mxu0 %v2908_v40  ;;  %1414 = vmatprep.subr.bf16.mxu1 %v2911_v41  ;;  %v2951_v41 = vld [vmem:[#allocation2 + $0x2e8] ss:$16 sps:$4 sm:$0xff]  }
  0x75   :  { %1374 = vmatpush2.bf16.msra.mxu0 %v2906_v42  ;;  %1415 = vmatpush2.bf16.msra.mxu1 %v2909_v43  ;;  %v2956_v43 = vld [vmem:[#allocation2 + $0xcc] ss:$16 sps:$4 sm:$0xff]  }
  0x76   :  { %1375 = vmatprep.subr.bf16.mxu0 %v2914_v44  ;;  %1416 = vmatprep.subr.bf16.mxu1 %v2917_v45  ;;  %v2959_v44 = vld [vmem:[#allocation2 + $0x2cc] ss:$16 sps:$4 sm:$0xff]   ;;  %v2954_v45 = vld [vmem:[#allocation2 + $0xc8] ss:$16 sps:$4 sm:$0xff]  }
  0x79   :  { %1376 = vmatpush2.bf16.msra.mxu0 %v2912_v46  ;;  %1417 = vmatpush2.bf16.msra.mxu1 %v2915_v47  ;;  %v2957_v46 = vld [vmem:[#allocation2 + $0x2c8] ss:$16 sps:$4 sm:$0xff]   ;;  %v2962_v47 = vld [vmem:[#allocation2 + $0xac] ss:$16 sps:$4 sm:$0xff]  }
  0x7a   :  { %1377 = vmatprep.subr.bf16.mxu0 %v2920_v48  ;;  %1418 = vmatprep.subr.bf16.mxu1 %v2923_v49  ;;  %v2965_v48 = vld [vmem:[#allocation2 + $0x2ac] ss:$16 sps:$4 sm:$0xff]   ;;  %v2960_v49 = vld [vmem:[#allocation2 + $0xa8] ss:$16 sps:$4 sm:$0xff]  }
  0x7d   :  { %1378 = vmatpush2.bf16.msra.mxu0 %v2918_v50  ;;  %1419 = vmatpush2.bf16.msra.mxu1 %v2921_v51  ;;  %v2963_v50 = vld [vmem:[#allocation2 + $0x2a8] ss:$16 sps:$4 sm:$0xff]   ;;  %v2968_v51 = vld [vmem:[#allocation2 + $0x8c] ss:$16 sps:$4 sm:$0xff]  }
  0x7e   :  { %1379 = vmatprep.subr.bf16.mxu0 %v2926_v52  ;;  %1420 = vmatprep.subr.bf16.mxu1 %v2929_v53  ;;  %v2971_v52 = vld [vmem:[#allocation2 + $0x28c] ss:$16 sps:$4 sm:$0xff]   ;;  %v2966_v53 = vld [vmem:[#allocation2 + $0x88] ss:$16 sps:$4 sm:$0xff]  }
  0x81   :  { %1380 = vmatpush2.bf16.msra.mxu0 %v2924_v54  ;;  %1421 = vmatpush2.bf16.msra.mxu1 %v2927_v55  ;;  %v2969_v54 = vld [vmem:[#allocation2 + $0x288] ss:$16 sps:$4 sm:$0xff]   ;;  %v2974_v55 = vld [vmem:[#allocation2 + $0x6c] ss:$16 sps:$4 sm:$0xff]  }
  0x82   :  { %1381 = vmatprep.subr.bf16.mxu0 %v2932_v56  ;;  %1422 = vmatprep.subr.bf16.mxu1 %v2935_v57  ;;  %v2977_v56 = vld [vmem:[#allocation2 + $0x26c] ss:$16 sps:$4 sm:$0xff]   ;;  %v2972_v57 = vld [vmem:[#allocation2 + $0x68] ss:$16 sps:$4 sm:$0xff]  }
  0x85   :  { %1382 = vmatpush2.bf16.msra.mxu0 %v2930_v58  ;;  %1423 = vmatpush2.bf16.msra.mxu1 %v2933_v59  ;;  %v2975_v58 = vld [vmem:[#allocation2 + $0x268] ss:$16 sps:$4 sm:$0xff]   ;;  %v2980_v59 = vld [vmem:[#allocation2 + $0x4c] ss:$16 sps:$4 sm:$0xff]  }
  0x86   :  { %1383 = vmatprep.subr.bf16.mxu0 %v2938_v60  ;;  %1424 = vmatprep.subr.bf16.mxu1 %v2941_v61  ;;  %v2983_v60 = vld [vmem:[#allocation2 + $0x24c] ss:$16 sps:$4 sm:$0xff]   ;;  %v2978_v61 = vld [vmem:[#allocation2 + $0x48] ss:$16 sps:$4 sm:$0xff]  }
  0x89   :  { %1384 = vmatpush2.bf16.msra.mxu0 %v2936_v62  ;;  %1425 = vmatpush2.bf16.msra.mxu1 %v2939_v63  ;;  %v2981_v62 = vld [vmem:[#allocation2 + $0x248] ss:$16 sps:$4 sm:$0xff]   ;;  %v2986_v63 = vld [vmem:[#allocation2 + $0x2c] ss:$16 sps:$4 sm:$0xff]  }
  0x8a   :  { %1385 = vmatprep.subr.bf16.mxu0 %v2944_v0  ;;  %1426 = vmatprep.subr.bf16.mxu1 %v2947_v1  ;;  %v2989_v0 = vld [vmem:[#allocation2 + $0x22c] ss:$16 sps:$4 sm:$0xff]   ;;  %v2984_v1 = vld [vmem:[#allocation2 + $0x28] ss:$16 sps:$4 sm:$0xff]  }
  0x8d   :  { %1386 = vmatpush2.bf16.msra.mxu0 %v2942_v2  ;;  %1427 = vmatpush2.bf16.msra.mxu1 %v2945_v3  ;;  %v2987_v2 = vld [vmem:[#allocation2 + $0x228] ss:$16 sps:$4 sm:$0xff]   ;;  %v2992_v3 = vld [vmem:[#allocation2 + $0xc] ss:$16 sps:$4 sm:$0xff]  }
  0x8e   :  { %1437 = vmatprep.subr.bf16.mxu0 %v2950_v4  ;;  %1478 = vmatprep.subr.bf16.mxu1 %v2953_v5  ;;  %v2995_v4 = vld [vmem:[#allocation2 + $0x20c] ss:$16 sps:$4 sm:$0xff]   ;;  %v2990_v5 = vld [vmem:[#allocation2 + $0x8] ss:$16 sps:$4 sm:$0xff]  }
 0x110   :  { %v501_v15 = vpop.f32.mrf.mxu0  ;;  %v542_v16 = vpop.f32.mrf.mxu1 }
 0x111   :  { %v502_v19 = vadd.f32 %v501_v15, %v130_v13  ;;  %v543_v20 = vadd.f32 %v542_v16, %v138_v14  ;;  %v2996_v13 = vld [vmem:[#allocation2 + $0x1e8] ss:$16 sps:$4 sm:$0xff]   ;;  %v3004_v15 = vld [vmem:[#allocation2 + $0x1cc] ss:$16 sps:$4 sm:$0xff]  }
 0x112   :  { %v503_v21 = vpop.f32.mrf.mxu0  ;;  %v544_v22 = vpop.f32.mrf.mxu1  ;;  %v2999_v14 = vld [vmem:[#allocation2 + $0x3e8] ss:$16 sps:$4 sm:$0xff]   ;;  %v3007_v16 = vld [vmem:[#allocation2 + $0x3cc] ss:$16 sps:$4 sm:$0xff]  }
 0x113   :  { %v553_v23 = vmul.f32 0.2, %v502_v19  ;;  %vm549_vm0 = vcmp.gt.f32.partialorder %v502_v19, 0.0  ;;  %v555_v24 = vmul.f32 0.2, %v543_v20  ;;  %v504_v25 = vadd.f32 %v503_v21, %v134_v17 }
 0x114   :  { %v545_v26 = vadd.f32 %v544_v22, %v142_v18  ;;  %v505_v27 = vpop.f32.mrf.mxu0  ;;  %v546_v28 = vpop.f32.mrf.mxu1  ;;  %vm551_vm1 = vcmp.gt.f32.partialorder %v543_v20, 0.0  ;;  %v3002_v17 = vld [vmem:[#allocation2 + $0x1c8] ss:$16 sps:$4 sm:$0xff]  }
 0x115   :  { %vm550_vm2 = vcmp.gt.f32.partialorder %v504_v25, 0.0  ;;  %v554_v29 = vmul.f32 0.2, %v504_v25  ;;  %v557_v32 = vsel %vm549_vm0, %v502_v19, %v553_v23  ;;  %v559_v34 = vsel %vm551_vm1, %v543_v20, %v555_v24  ;;  %v3005_v18 = vld [vmem:[#allocation2 + $0x3c8] ss:$16 sps:$4 sm:$0xff]  }
 0x116   :  { %v506_v30 = vpop.f32.mrf.mxu0  ;;  %v547_v31 = vpop.f32.mrf.mxu1  ;;  %vm552_vm3 = vcmp.gt.f32.partialorder %v545_v26, 0.0  ;;  %v556_v33 = vmul.f32 0.2, %v545_v26  ;;  %v3472_v39 = vpack.c.bf16 %v557_v32, %v557_v32  ;;  %v3474_v42 = vpack.c.bf16 %v559_v34, %v559_v34  ;;  %v3010_v19 = vld [vmem:[#allocation2 + $0x1ac] ss:$16 sps:$4 sm:$0xff]  }
 0x117   :  { %v558_v35 = vsel %vm550_vm2, %v504_v25, %v554_v29  ;;  %v3013_v20 = vld [vmem:[#allocation2 + $0x3ac] ss:$16 sps:$4 sm:$0xff]   ;;  %v3008_v21 = vld [vmem:[#allocation2 + $0x1a8] ss:$16 sps:$4 sm:$0xff]  }
 0x118   :  { %v562_v36 = vpack.c.bf16 %v558_v35, %v558_v35  ;;  %v560_v37 = vsel %vm552_vm3, %v545_v26, %v556_v33  ;;  %v3011_v22 = vld [vmem:[#allocation2 + $0x3a8] ss:$16 sps:$4 sm:$0xff]   ;;  %v3016_v23 = vld [vmem:[#allocation2 + $0x18c] ss:$16 sps:$4 sm:$0xff]  }
 0x119   :  { %v564_v40 = vpack.c.bf16 %v560_v37, %v560_v37  ;;  %v3019_v24 = vld [vmem:[#allocation2 + $0x38c] ss:$16 sps:$4 sm:$0xff]   ;;  %v3014_v25 = vld [vmem:[#allocation2 + $0x188] ss:$16 sps:$4 sm:$0xff]  }
 0x11a   :  { %1387 = vmatprep.mubr.bf16.mxu0 %v562_v36  ;;  %v3017_v26 = vld [vmem:[#allocation2 + $0x388] ss:$16 sps:$4 sm:$0xff]   ;;  %v3022_v27 = vld [vmem:[#allocation2 + $0x16c] ss:$16 sps:$4 sm:$0xff]  }
 0x11b   :  { %1428 = vmatprep.mubr.bf16.mxu1 %v564_v40  ;;  %1388 = vmatmul.mubr.bf16.vlgmr.msra.gmra.mxu0 %v3472_v39  ;;  %v3025_v28 = vld [vmem:[#allocation2 + $0x36c] ss:$16 sps:$4 sm:$0xff]   ;;  %v3020_v29 = vld [vmem:[#allocation2 + $0x168] ss:$16 sps:$4 sm:$0xff]  }
 0x11c   :  { %1429 = vmatmul.mubr.bf16.vlgmr.msra.gmra.mxu1 %v3474_v42  ;;  %1438 = vmatpush1.bf16.msra.mxu0 %v2948_v38  ;;  %v3023_v30 = vld [vmem:[#allocation2 + $0x368] ss:$16 sps:$4 sm:$0xff]   ;;  %v3028_v31 = vld [vmem:[#allocation2 + $0x14c] ss:$16 sps:$4 sm:$0xff]  }
 0x11d   :  { %1479 = vmatpush1.bf16.msra.mxu1 %v2951_v41  ;;  %1469 = vmatprep.mubr.bf16.mxu0 %v562_v36  ;;  %v3031_v32 = vld [vmem:[#allocation2 + $0x34c] ss:$16 sps:$4 sm:$0xff]   ;;  %v3026_v33 = vld [vmem:[#allocation2 + $0x148] ss:$16 sps:$4 sm:$0xff]  }
 0x11e   :  { %1510 = vmatprep.mubr.bf16.mxu1 %v564_v40  ;;  %1439 = vmatprep.subr.bf16.mxu0 %v2956_v43  ;;  %v3029_v34 = vld [vmem:[#allocation2 + $0x348] ss:$16 sps:$4 sm:$0xff]   ;;  %v3034_v35 = vld [vmem:[#allocation2 + $0x12c] ss:$16 sps:$4 sm:$0xff]  }
 0x11f   :  { %1480 = vmatprep.subr.bf16.mxu1 %v2959_v44  ;;  %v3037_v36 = vld [vmem:[#allocation2 + $0x32c] ss:$16 sps:$4 sm:$0xff]   ;;  %v3032_v37 = vld [vmem:[#allocation2 + $0x128] ss:$16 sps:$4 sm:$0xff]  }
 0x120   :  { %1440 = vmatpush1.bf16.msra.mxu0 %v2954_v45  ;;  %v3035_v38 = vld [vmem:[#allocation2 + $0x328] ss:$16 sps:$4 sm:$0xff]   ;;  %v3040_v40 = vld [vmem:[#allocation2 + $0x10c] ss:$16 sps:$4 sm:$0xff]  }
 0x121   :  { %1481 = vmatpush1.bf16.msra.mxu1 %v2957_v46  ;;  %1441 = vmatprep.subr.bf16.mxu0 %v2962_v47  ;;  %v3043_v41 = vld [vmem:[#allocation2 + $0x30c] ss:$16 sps:$4 sm:$0xff]   ;;  %v3038_v43 = vld [vmem:[#allocation2 + $0x108] ss:$16 sps:$4 sm:$0xff]   ;;  %v3046_v47 = vld [vmem:[%s3751_s7 + $0x70] sm:$0xff]  }
 0x122   :  { %1482 = vmatprep.subr.bf16.mxu1 %v2965_v48  ;;  %v3041_v44 = vld [vmem:[#allocation2 + $0x308] ss:$16 sps:$4 sm:$0xff]  }
 0x123   :  { %v3044_v45 = vld [vmem:[%s3751_s7 + $0x78] sm:$0xff]   ;;  %v3049_v48 = vld [vmem:[%s3751_s7 + $0x28] sm:$0xff]  }
 0x124   :  { %1442 = vmatpush1.bf16.msra.mxu0 %v2960_v49  ;;  %v3045_v46 = vld [vmem:[%s3751_s7 + $0x38] sm:$0xff]   ;;  %v3050_v49 = vld [vmem:[%s3751_s7 + $0x60] sm:$0xff]  }
 0x125   :  { %1483 = vmatpush1.bf16.msra.mxu1 %v2963_v50  ;;  %1443 = vmatprep.subr.bf16.mxu0 %v2968_v51  ;;  %v3051_v50 = vld [vmem:[%s3751_s7 + $0x20] sm:$0xff]   ;;  %v3052_v51 = vld [vmem:[%s3751_s7 + $0x58] sm:$0xff]  }
 0x126   :  { %1484 = vmatprep.subr.bf16.mxu1 %v2971_v52  ;;  %v3053_v52 = vld [vmem:[%s3751_s7 + $0x18] sm:$0xff]  }
 0x128   :  { %1444 = vmatpush1.bf16.msra.mxu0 %v2966_v53  ;;  %v3054_v53 = vld [vmem:[%s3751_s7 + $0x50] sm:$0xff]  }
 0x129   :  { %1485 = vmatpush1.bf16.msra.mxu1 %v2969_v54  ;;  %1445 = vmatprep.subr.bf16.mxu0 %v2974_v55  ;;  %v3055_v54 = vld [vmem:[%s3751_s7 + $0x10] sm:$0xff]   ;;  %v3056_v55 = vld [vmem:[%s3751_s7 + $0x48] sm:$0xff]  }
 0x12a   :  { %1486 = vmatprep.subr.bf16.mxu1 %v2977_v56  ;;  %v3057_v56 = vld [vmem:[%s3751_s7 + $0x8] sm:$0xff]  }
 0x12c   :  { %1446 = vmatpush1.bf16.msra.mxu0 %v2972_v57  ;;  %v3058_v57 = vld [vmem:[%s3751_s7 + $0x40] sm:$0xff]  }
 0x12d   :  { %1487 = vmatpush1.bf16.msra.mxu1 %v2975_v58  ;;  %1447 = vmatprep.subr.bf16.mxu0 %v2980_v59  ;;  %v3059_v58 = vld [vmem:[%s3751_s7] sm:$0xff]   ;;  %v3060_v59 = vld [vmem:[%s3753_s9 + $0x78] sm:$0xff]  }
 0x12e   :  { %1488 = vmatprep.subr.bf16.mxu1 %v2983_v60  ;;  %v3076_v60 = vld [vmem:[%s3751_s7 + $0xf8] sm:$0xff]  }
 0x130   :  { %1448 = vmatpush1.bf16.msra.mxu0 %v2978_v61  ;;  %v3077_v61 = vld [vmem:[%s3751_s7 + $0xb8] sm:$0xff]  }
 0x131   :  { %1489 = vmatpush1.bf16.msra.mxu1 %v2981_v62  ;;  %1449 = vmatprep.subr.bf16.mxu0 %v2986_v63  ;;  %v3078_v62 = vld [vmem:[%s3751_s7 + $0xf0] sm:$0xff]  }
 0x132   :  { %1490 = vmatprep.subr.bf16.mxu1 %v2989_v0  ;;  %v3079_v63 = vld [vmem:[%s3751_s7 + $0xb0] sm:$0xff]   ;;  %v3080_v0 = vld [vmem:[%s3751_s7 + $0xe8] sm:$0xff]  }
 0x134   :  { %1450 = vmatpush1.bf16.msra.mxu0 %v2984_v1  ;;  %v3081_v1 = vld [vmem:[%s3751_s7 + $0xa8] sm:$0xff]  }
 0x135   :  { %1491 = vmatpush1.bf16.msra.mxu1 %v2987_v2  ;;  %1451 = vmatprep.subr.bf16.mxu0 %v2992_v3  ;;  %v3082_v2 = vld [vmem:[%s3751_s7 + $0xe0] sm:$0xff]  }
 0x136   :  { %1492 = vmatprep.subr.bf16.mxu1 %v2995_v4  ;;  %v3083_v3 = vld [vmem:[%s3751_s7 + $0xa0] sm:$0xff]   ;;  %v3084_v4 = vld [vmem:[%s3751_s7 + $0xd8] sm:$0xff]  }
 0x138   :  { %1452 = vmatpush1.bf16.msra.mxu0 %v2990_v5  ;;  %v3085_v5 = vld [vmem:[%s3751_s7 + $0x98] sm:$0xff]  }
 0x139   :  { %1493 = vmatpush1.bf16.msra.mxu1 %v2993_v6  ;;  %1453 = vmatprep.subr.bf16.mxu0 %v2998_v7  ;;  %v3086_v6 = vld [vmem:[%s3751_s7 + $0xd0] sm:$0xff]  }
 0x13a   :  { %1494 = vmatprep.subr.bf16.mxu1 %v3001_v10  ;;  %v3087_v7 = vld [vmem:[%s3751_s7 + $0x90] sm:$0xff]   ;;  %v3088_v10 = vld [vmem:[%s3751_s7 + $0xc8] sm:$0xff]  }
 0x13c   :  { %1454 = vmatpush2.bf16.msra.mxu0 %v2996_v13  ;;  %v3089_v13 = vld [vmem:[%s3751_s7 + $0x88] sm:$0xff]  }
 0x13d   :  { %1495 = vmatpush2.bf16.msra.mxu1 %v2999_v14  ;;  %1455 = vmatprep.subr.bf16.mxu0 %v3004_v15  ;;  %v3090_v14 = vld [vmem:[%s3751_s7 + $0xc0] sm:$0xff]  }
 0x13e   :  { %1496 = vmatprep.subr.bf16.mxu1 %v3007_v16  ;;  %v3091_v15 = vld [vmem:[%s3751_s7 + $0x80] sm:$0xff]   ;;  %v3092_v16 = vld [vmem:[%s3753_s9 + $0xf8] sm:$0xff]  }
 0x140   :  { %1456 = vmatpush2.bf16.msra.mxu0 %v3002_v17  ;;  %v3585_v17 = vld [vmem:[%s3748_s4] sm:$0xf] }
 0x141   :  { %1497 = vmatpush2.bf16.msra.mxu1 %v3005_v18  ;;  %1457 = vmatprep.subr.bf16.mxu0 %v3010_v19  ;;  %v698_v18 = vrot.slane %v3585_v17, %v3457_v8  ;;  %v702_v19 = vrot.slane %v3585_v17, %v3464_v11 }
 0x142   :  { %1498 = vmatprep.subr.bf16.mxu1 %v3013_v20 }
 0x144   :  { %1458 = vmatpush2.bf16.msra.mxu0 %v3008_v21 }
 0x145   :  { %1499 = vmatpush2.bf16.msra.mxu1 %v3011_v22  ;;  %1459 = vmatprep.subr.bf16.mxu0 %v3016_v23 }
 0x146   :  { %1500 = vmatprep.subr.bf16.mxu1 %v3019_v24 }
 0x148   :  { %1460 = vmatpush2.bf16.msra.mxu0 %v3014_v25 }
 0x149   :  { %1501 = vmatpush2.bf16.msra.mxu1 %v3017_v26  ;;  %1461 = vmatprep.subr.bf16.mxu0 %v3022_v27 }
 0x14a   :  { %1502 = vmatprep.subr.bf16.mxu1 %v3025_v28 }
 0x14c   :  { %1462 = vmatpush2.bf16.msra.mxu0 %v3020_v29 }
 0x14d   :  { %1503 = vmatpush2.bf16.msra.mxu1 %v3023_v30  ;;  %1463 = vmatprep.subr.bf16.mxu0 %v3028_v31 }
 0x14e   :  { %1504 = vmatprep.subr.bf16.mxu1 %v3031_v32 }
 0x150   :  { %1464 = vmatpush2.bf16.msra.mxu0 %v3026_v33 }
 0x151   :  { %1505 = vmatpush2.bf16.msra.mxu1 %v3029_v34  ;;  %1465 = vmatprep.subr.bf16.mxu0 %v3034_v35 }
 0x152   :  { %1506 = vmatprep.subr.bf16.mxu1 %v3037_v36 }
 0x154   :  { %1466 = vmatpush2.bf16.msra.mxu0 %v3032_v37 }
 0x155   :  { %1507 = vmatpush2.bf16.msra.mxu1 %v3035_v38  ;;  %1467 = vmatprep.subr.bf16.mxu0 %v3040_v40 }
 0x156   :  { %1508 = vmatprep.subr.bf16.mxu1 %v3043_v41 }
 0x158   :  { %1468 = vmatpush2.bf16.msra.mxu0 %v3038_v43 }
 0x159   :  { %1509 = vmatpush2.bf16.msra.mxu1 %v3041_v44  ;;  %2663 = vmatprep.subr.bf16.mxu0 %v3044_v45 }
 0x15a   :  { %2685 = vmatprep.subr.bf16.mxu1 %v3076_v60 }
 0x15b   :  { %1470 = vmatmul.mubr.bf16.vlgmr.msra.gmra.mxu0 %v3472_v39  ;;  %v3047_v39 = vld [vmem:[%s3751_s7 + $0x30] sm:$0xff]  }
 0x15c   :  { %1511 = vmatmul.mubr.bf16.vlgmr.msra.gmra.mxu1 %v3474_v42  ;;  %2664 = vmatpush3.bf16.msra.mxu0 %v3045_v46  ;;  %v3048_v42 = vld [vmem:[%s3751_s7 + $0x68] sm:$0xff]  }
 0x15d   :  { %2665 = vmatprep.subr.bf16.mxu0 %v3046_v47  ;;  %2686 = vmatpush3.bf16.msra.mxu1 %v3077_v61 }
 0x15e   :  { %2687 = vmatprep.subr.bf16.mxu1 %v3078_v62 }
 0x160   :  { %2666 = vmatpush3.bf16.msra.mxu0 %v3047_v39 }
 0x161   :  { %2667 = vmatprep.subr.bf16.mxu0 %v3048_v42  ;;  %2688 = vmatpush3.bf16.msra.mxu1 %v3079_v63 }
 0x162   :  { %2689 = vmatprep.subr.bf16.mxu1 %v3080_v0 }
 0x164   :  { %2668 = vmatpush3.bf16.msra.mxu0 %v3049_v48 }
 0x165   :  { %2669 = vmatprep.subr.bf16.mxu0 %v3050_v49  ;;  %2690 = vmatpush3.bf16.msra.mxu1 %v3081_v1 }
 0x166   :  { %2691 = vmatprep.subr.bf16.mxu1 %v3082_v2 }
 0x168   :  { %2670 = vmatpush3.bf16.msra.mxu0 %v3051_v50 }
 0x169   :  { %2671 = vmatprep.subr.bf16.mxu0 %v3052_v51  ;;  %2692 = vmatpush3.bf16.msra.mxu1 %v3083_v3 }
 0x16a   :  { %2693 = vmatprep.subr.bf16.mxu1 %v3084_v4 }
 0x16c   :  { %2672 = vmatpush3.bf16.msra.mxu0 %v3053_v52 }
 0x16d   :  { %2673 = vmatprep.subr.bf16.mxu0 %v3054_v53  ;;  %2694 = vmatpush3.bf16.msra.mxu1 %v3085_v5 }
 0x16e   :  { %2695 = vmatprep.subr.bf16.mxu1 %v3086_v6  ;;  %v3594_v6 = vld [vmem:[%s3749_s5] sm:$0xf] }
 0x170   :  { %2674 = vmatpush3.bf16.msra.mxu0 %v3055_v54 }
 0x171   :  { %2675 = vmatprep.subr.bf16.mxu0 %v3056_v55  ;;  %2696 = vmatpush3.bf16.msra.mxu1 %v3087_v7  ;;  %v3599_v7 = vld [vmem:[%s3750_s6] sm:$0xf] }
 0x172   :  { %2697 = vmatprep.subr.bf16.mxu1 %v3088_v10 }
 0x174   :  { %2676 = vmatpush3.bf16.msra.mxu0 %v3057_v56 }
 0x175   :  { %2677 = vmatprep.subr.bf16.mxu0 %v3058_v57  ;;  %2698 = vmatpush3.bf16.msra.mxu1 %v3089_v13  ;;  %v1612_v13 = vrot.slane %v3594_v6, %v3457_v8 }
 0x176   :  { %2699 = vmatprep.subr.bf16.mxu1 %v3090_v14 }
 0x178   :  { %2678 = vmatpush3.bf16.msra.mxu0 %v3059_v58 }
 0x179   :  { %2707 = vmatprep.subr.bf16.mxu0 %v3060_v59  ;;  %2700 = vmatpush3.bf16.msra.mxu1 %v3091_v15 }
 0x17a   :  { %2729 = vmatprep.subr.bf16.mxu1 %v3092_v16  ;;  %v1638_v16 = vrot.slane %v3599_v7, %v3457_v8 }
 0x1db   :  { %v1389_v20 = vpop.f32.mrf.mxu0 }
 0x1dc   :  { %v1390_v21 = vadd.f32 %v1389_v20, %v698_v18  ;;  %v1430_v22 = vpop.f32.mrf.mxu1 }
 0x1dd   :  { %v1391_v23 = vpop.f32.mrf.mxu0 }
 0x1de   :  { %v1431_v24 = vadd.f32 %v1430_v22, %v1390_v21  ;;  %v1392_v25 = vadd.f32 %v1391_v23, %v702_v19  ;;  %v1432_v26 = vpop.f32.mrf.mxu1  ;;  %v1616_v19 = vrot.slane %v3594_v6, %v3464_v11  ;;  %v1642_v23 = vrot.slane %v3599_v7, %v3464_v11  ;;  %v3062_v11 = vld [vmem:[%s3753_s9 + $0x70] sm:$0xff]  }
 0x1df   :  { %v1393_v27 = vpop.f32.mrf.mxu0 }
 0x1e0   :  { %v1519_v28 = vrot.slane %v1431_v24, 4  ;;  %v1547_v29 = vmul.f32 %v1431_v24, %v1431_v24  ;;  %v1433_v30 = vadd.f32 %v1432_v26, %v1392_v25  ;;  %v1434_v31 = vpop.f32.mrf.mxu1 }
 0x1e1   :  { %v1394_v32 = vpop.f32.mrf.mxu0 }
 0x1e2   :  { %v1520_v33 = vadd.f32 %v1519_v28, %v1431_v24  ;;  %v1551_v34 = vrot.slane %v1547_v29, 4  ;;  %v1525_v35 = vrot.slane %v1433_v30, 4  ;;  %v1548_v36 = vmul.f32 %v1433_v30, %v1433_v30  ;;  %v1435_v37 = vpop.f32.mrf.mxu1 }
 0x1e3   :  { %v3066_v37 = vld [vmem:[%s3753_s9 + $0x60] sm:$0xff]  }
 0x1e4   :  { %v1521_v38 = vrot.slane %v1520_v33, 2  ;;  %v1552_v40 = vadd.f32 %v1551_v34, %v1547_v29  ;;  %v1526_v41 = vadd.f32 %v1525_v35, %v1433_v30  ;;  %v1557_v43 = vrot.slane %v1548_v36, 4  ;;  %v3064_v34 = vld [vmem:[%s3753_s9 + $0x68] sm:$0xff]  }
 0x1e5   :  { %v706_v35 = vrot.slane %v3585_v17, %v3459_v9 }
 0x1e6   :  { %v1522_v44 = vadd.f32 %v1521_v38, %v1520_v33  ;;  %v1553_v45 = vrot.slane %v1552_v40, 2  ;;  %v1527_v46 = vrot.slane %v1526_v41, 2  ;;  %v1558_v47 = vadd.f32 %v1557_v43, %v1548_v36  ;;  %v3063_v33 = vld [vmem:[%s3753_s9 + $0x30] sm:$0xff]   ;;  %v3065_v36 = vld [vmem:[%s3753_s9 + $0x28] sm:$0xff]  }
 0x1e7   :  { %v710_v38 = vrot.slane %v3585_v17, %v3466_v12 }
 0x1e8   :  { %v1523_v39 = vrot.slane %v1522_v44, 1  ;;  %v1554_v42 = vadd.f32 %v1553_v45, %v1552_v40  ;;  %v1528_v48 = vadd.f32 %v1527_v46, %v1526_v41  ;;  %v1559_v49 = vrot.slane %v1558_v47, 2  ;;  %v3068_v46 = vld [vmem:[%s3753_s9 + $0x58] sm:$0xff]  }
 0x1ea   :  { %v1524_v50 = vadd.f32 %v1523_v39, %v1522_v44  ;;  %v1555_v51 = vrot.slane %v1554_v42, 1  ;;  %v1529_v52 = vrot.slane %v1528_v48, 1  ;;  %v1560_v53 = vadd.f32 %v1559_v49, %v1558_v47  ;;  %v3067_v44 = vld [vmem:[%s3753_s9 + $0x20] sm:$0xff]  }
 0x1ec   :  { %v1543_v54 = vmul.f32 0.125, %v1524_v50  ;;  %v1556_v55 = vadd.f32 %v1555_v51, %v1554_v42  ;;  %v1530_v56 = vadd.f32 %v1529_v52, %v1528_v48  ;;  %v1561_v57 = vrot.slane %v1560_v53, 1  ;;  %v3069_v52 = vld [vmem:[%s3753_s9 + $0x18] sm:$0xff]  }
 0x1ee   :  { %v1575_v58 = vmul.f32 0.125, %v1556_v55  ;;  %v1579_v59 = vmul.f32 %v1543_v54, %v1543_v54  ;;  %v1544_v60 = vmul.f32 0.125, %v1530_v56  ;;  %v1562_v61 = vadd.f32 %v1561_v57, %v1560_v53 }
 0x1ef   :  { %v1591_v10 = vsub.f32 %v1431_v24, %v1543_v54  ;;  %v3070_v54 = vld [vmem:[%s3753_s9 + $0x50] sm:$0xff]  }
 0x1f0   :  { %v1583_v62 = vsub.f32 %v1575_v58, %v1579_v59  ;;  %v1580_v63 = vmul.f32 %v1544_v60, %v1544_v60  ;;  %v1576_v0 = vmul.f32 0.125, %v1562_v61  ;;  %v1592_v18 = vsub.f32 %v1433_v30, %v1544_v60  ;;  %v3061_v30 = vld [vmem:[%s3753_s9 + $0x38] sm:$0xff]  }
 0x1f2   :  { %v1587_v1 = vmax.f32 %v1583_v62, 0.0  ;;  %v1584_v2 = vsub.f32 %v1576_v0, %v1580_v63  ;;  %v3071_v0 = vld [vmem:[%s3753_s9 + $0x10] sm:$0xff]  }
 0x1f4   :  { %v1595_v3 = vadd.f32 1e-05, %v1587_v1  ;;  %v1588_v4 = vmax.f32 %v1584_v2, 0.0  ;;  %v3072_v1 = vld [vmem:[%s3753_s9 + $0x48] sm:$0xff]  }
 0x1f6   :  { %3108 = vrsqrt.f32 %v1595_v3  ;;  %v1596_v5 = vadd.f32 1e-05, %v1588_v4 }
 0x1f8   :  { %3110 = vrsqrt.f32 %v1596_v5 }
 0x203   :  { %v3109_v14 = vpop.eup %3108 }
 0x204   :  { %v1603_v15 = vmul.f32 %v3109_v14, %v1591_v10 }
 0x205   :  { %v3111_v20 = vpop.eup %3110 }
 0x206   :  { %v1629_v21 = vmul.f32 %v1612_v13, %v1603_v15  ;;  %v1604_v22 = vmul.f32 %v3111_v20, %v1592_v18  ;;  %v3074_v18 = vld [vmem:[%s3753_s9 + $0x40] sm:$0xff]  }
 0x208   :  { %v1655_v25 = vadd.f32 %v1638_v16, %v1629_v21  ;;  %v1630_v24 = vmul.f32 %v1616_v19, %v1604_v22  ;;  %v3073_v16 = vld [vmem:[%s3753_s9 + $0x8] sm:$0xff]  }
 0x20a   :  { %v1663_v26 = vmul.f32 0.2, %v1655_v25  ;;  %v1656_v27 = vadd.f32 %v1642_v23, %v1630_v24  ;;  %vm1659_vm4 = vcmp.gt.f32.partialorder %v1655_v25, 0.0 }
 0x20c   :  { %vm1660_vm5 = vcmp.gt.f32.partialorder %v1656_v27, 0.0  ;;  %v1664_v28 = vmul.f32 0.2, %v1656_v27  ;;  %v1667_v29 = vsel %vm1659_vm4, %v1655_v25, %v1663_v26 }
 0x20d   :  { %v3612_v32 = vpack.c.bf16 %v1667_v29, %v1667_v29 }
 0x20e   :  { %v1668_v31 = vsel %vm1660_vm5, %v1656_v27, %v1664_v28  ;;  %v3075_v27 = vld [vmem:[%s3753_s9] sm:$0xff]  }
 0x20f   :  { %v1672_v8 = vpack.c.bf16 %v1668_v31, %v1668_v31 }
 0x211   :  { %1970 = vmatprep.mubr.bf16.mxu0 %v1672_v8 }
 0x212   :  { %1971 = vmatmul.mubr.bf16.vlgmr.msra.gmra.mxu0 %v3612_v32 }
 0x213   :  { %2708 = vmatpush3.bf16.msra.mxu0 %v3061_v30  ;;  %2315 = vmatprep.mubr.bf16.mxu0 %v1672_v8 }
 0x214   :  { %2709 = vmatprep.subr.bf16.mxu0 %v3062_v11 }
 0x217   :  { %2710 = vmatpush3.bf16.msra.mxu0 %v3063_v33 }
 0x218   :  { %2711 = vmatprep.subr.bf16.mxu0 %v3064_v34 }
 0x21b   :  { %v1471_v40 = vpop.f32.mrf.mxu0  ;;  %2712 = vmatpush3.bf16.msra.mxu0 %v3065_v36 }
 0x21c   :  { %v1472_v41 = vadd.f32 %v1471_v40, %v706_v35  ;;  %v1512_v43 = vpop.f32.mrf.mxu1  ;;  %2713 = vmatprep.subr.bf16.mxu0 %v3066_v37 }
 0x21d   :  { %v1473_v45 = vpop.f32.mrf.mxu0 }
 0x21e   :  { %v3640_v47 = vadd.f32 %v1512_v43, %v1472_v41  ;;  %v1474_v39 = vadd.f32 %v1473_v45, %v710_v38  ;;  %v1514_v42 = vpop.f32.mrf.mxu1  ;;  %v1620_v41 = vrot.slane %v3594_v6, %v3459_v9  ;;  %v1646_v45 = vrot.slane %v3599_v7, %v3459_v9 }
 0x21f   :  { %v1475_v48 = vpop.f32.mrf.mxu0  ;;  %2714 = vmatpush3.bf16.msra.mxu0 %v3067_v44 }
 0x220   :  { %v1531_v17 = vrot.slane %v3640_v47, 4  ;;  %v1549_v49 = vmul.f32 %v3640_v47, %v3640_v47  ;;  %v3645_v50 = vadd.f32 %v1514_v42, %v1474_v39  ;;  %v1516_v51 = vpop.f32.mrf.mxu1  ;;  %2715 = vmatprep.subr.bf16.mxu0 %v3068_v46 }
 0x221   :  { %v1476_v53 = vpop.f32.mrf.mxu0 }
 0x222   :  { %v1532_v55 = vadd.f32 %v1531_v17, %v3640_v47  ;;  %v1563_v56 = vrot.slane %v1549_v49, 4  ;;  %v1537_v57 = vrot.slane %v3645_v50, 4  ;;  %v1550_v58 = vmul.f32 %v3645_v50, %v3645_v50  ;;  %v1517_v59 = vpop.f32.mrf.mxu1 }
 0x223   :  { %2716 = vmatpush3.bf16.msra.mxu0 %v3069_v52  ;;  %v1650_v17 = vrot.slane %v3599_v7, %v3466_v12  ;;  %v3096_v7 = vld [vmem:[%s3753_s9 + $0xe8] sm:$0xff]   ;;  %v3099_v59 = vld [vmem:[%s3753_s9 + $0xa0] sm:$0xff]  }
 0x224   :  { %v1533_v60 = vrot.slane %v1532_v55, 2  ;;  %v1564_v61 = vadd.f32 %v1563_v56, %v1549_v49  ;;  %v1538_v62 = vadd.f32 %v1537_v57, %v3645_v50  ;;  %v1569_v63 = vrot.slane %v1550_v58, 4  ;;  %2717 = vmatprep.subr.bf16.mxu0 %v3070_v54  ;;  %v3094_v56 = vld [vmem:[%s3753_s9 + $0xf0] sm:$0xff]   ;;  %v3097_v57 = vld [vmem:[%s3753_s9 + $0xa8] sm:$0xff]  }
 0x226   :  { %v1534_v2 = vadd.f32 %v1533_v60, %v1532_v55  ;;  %v1565_v3 = vrot.slane %v1564_v61, 2  ;;  %v1539_v4 = vrot.slane %v1538_v62, 2  ;;  %v1570_v5 = vadd.f32 %v1569_v63, %v1550_v58  ;;  %v3098_v58 = vld [vmem:[%s3753_s9 + $0xe0] sm:$0xff]   ;;  %v3100_v60 = vld [vmem:[%s3753_s9 + $0xd8] sm:$0xff]   ;;  %v3103_v63 = vld [vmem:[%s3753_s9 + $0x90] sm:$0xff]  }
 0x227   :  { %2718 = vmatpush3.bf16.msra.mxu0 %v3071_v0  ;;  %v3104_v0 = vld [vmem:[%s3753_s9 + $0xc8] sm:$0xff]  }
 0x228   :  { %v1535_v10 = vrot.slane %v1534_v2, 1  ;;  %v1566_v13 = vadd.f32 %v1565_v3, %v1564_v61  ;;  %v1540_v14 = vadd.f32 %v1539_v4, %v1538_v62  ;;  %v1571_v15 = vrot.slane %v1570_v5, 2  ;;  %2719 = vmatprep.subr.bf16.mxu0 %v3072_v1  ;;  %v3101_v61 = vld [vmem:[%s3753_s9 + $0x98] sm:$0xff]   ;;  %v3102_v62 = vld [vmem:[%s3753_s9 + $0xd0] sm:$0xff]   ;;  %v3105_v1 = vld [vmem:[%s3753_s9 + $0x88] sm:$0xff]  }
 0x229   :  { %v3107_v3 = vld [vmem:[%s3753_s9 + $0x80] sm:$0xff]  }
 0x22a   :  { %v1536_v19 = vadd.f32 %v1535_v10, %v1534_v2  ;;  %v1567_v20 = vrot.slane %v1566_v13, 1  ;;  %v1541_v21 = vrot.slane %v1540_v14, 1  ;;  %v1572_v22 = vadd.f32 %v1571_v15, %v1570_v5  ;;  %v3106_v2 = vld [vmem:[%s3753_s9 + $0xc0] sm:$0xff]  }
 0x22b   :  { %2720 = vmatpush3.bf16.msra.mxu0 %v3073_v16 }
 0x22c   :  { %v1545_v23 = vmul.f32 0.125, %v1536_v19  ;;  %v1568_v25 = vadd.f32 %v1567_v20, %v1566_v13  ;;  %v1542_v24 = vadd.f32 %v1541_v21, %v1540_v14  ;;  %v1573_v26 = vrot.slane %v1572_v22, 1  ;;  %2721 = vmatprep.subr.bf16.mxu0 %v3074_v18  ;;  %v2597_v20 = vld [vmem:[%s3752_s8] ss:$0 sm:$0xff]  ;;  %s3189_s8 = smov [#allocation5]  }
 0x22e   :  { %v1577_v28 = vmul.f32 0.125, %v1568_v25  ;;  %v1581_v29 = vmul.f32 %v1545_v23, %v1545_v23  ;;  %v1546_v31 = vmul.f32 0.125, %v1542_v24  ;;  %v1574_v8 = vadd.f32 %v1573_v26, %v1572_v22 }
 0x22f   :  { %2722 = vmatpush3.bf16.msra.mxu0 %v3075_v27  ;;  %v1593_v40 = vsub.f32 %v3640_v47, %v1545_v23 }
 0x230   :  { %v1585_v30 = vsub.f32 %v1577_v28, %v1581_v29  ;;  %v1582_v11 = vmul.f32 %v1546_v31, %v1546_v31  ;;  %v1578_v33 = vmul.f32 0.125, %v1574_v8  ;;  %v1594_v46 = vsub.f32 %v3645_v50, %v1546_v31  ;;  %v2630_v29 = vld [vmem:[%s3754_s10] ss:$0 sm:$0xff]  ;;  %s2382_s10 = sshll.u32 %s3189_s8, 4  ;;  %s2383_s10 = int_to_ptr.vmem [resolvable:$true] %s2382_s10 }
 0x231   :  { %s3140_s22 = scalar_lea.vmem %s2383_s10, 128  ;;  %p3145_p6 = scmp.lt.s32.totalorder %s2383_s10, %s2383_s10 }
 0x232   :  { %v1589_v34 = vmax.f32 %v1585_v30, 0.0  ;;  %v1586_v35 = vsub.f32 %v1578_v33, %v1582_v11  ;;  %2316 = vmatmul.mubr.bf16.vlgmr.msra.gmra.mxu0 %v3612_v32  ;;  %v1624_v32 = vrot.slane %v3594_v6, %v3466_v12  ;;  %v3093_v6 = vld [vmem:[%s3753_s9 + $0xb8] sm:$0xff]   ;;  %v3095_v12 = vld [vmem:[%s3753_s9 + $0xb0] sm:$0xff]   ;;  %p3141_p5 = scmp.ne.s32.totalorder %s2383_s10, %s3140_s22  ;;  %p3146_p7 = scmp.lt.s32.totalorder %s3140_s22, %s3140_s22 }
 0x234   :  { %v1597_v36 = vadd.f32 1e-05, %v1589_v34  ;;  %v1590_v37 = vmax.f32 %v1586_v35, 0.0  ;;  %p3147_p8 = por %p3146_p7, %p3145_p6 }
 0x236   :  { %3112 = vrsqrt.f32 %v1597_v36  ;;  %v1598_v38 = vadd.f32 1e-05, %v1590_v37  ;;  %p3148_p9 = pnand %p3147_p8, %p3141_p5 }
 0x238   :  { %3114 = vrsqrt.f32 %v1598_v38 }
 0x243   :  { %v3113_v43 = vpop.eup %3112 }
 0x244   :  { %v1605_v44 = vmul.f32 %v3113_v43, %v1593_v40 }
 0x245   :  { %v3115_v39 = vpop.eup %3114 }
 0x246   :  { %v1631_v42 = vmul.f32 %v1620_v41, %v1605_v44  ;;  %v1606_v48 = vmul.f32 %v3115_v39, %v1594_v46 }
 0x248   :  { %v1657_v47 = vadd.f32 %v1646_v45, %v1631_v42  ;;  %v1632_v49 = vmul.f32 %v1624_v32, %v1606_v48 }
 0x24a   :  { %v1665_v51 = vmul.f32 0.2, %v1657_v47  ;;  %v1658_v52 = vadd.f32 %v1650_v17, %v1632_v49  ;;  %vm1661_vm6 = vcmp.gt.f32.partialorder %v1657_v47, 0.0 }
 0x24c   :  { %vm1662_vm7 = vcmp.gt.f32.partialorder %v1658_v52, 0.0  ;;  %v1666_v53 = vmul.f32 0.2, %v1658_v52  ;;  %v1669_v54 = vsel %vm1661_vm6, %v1657_v47, %v1665_v51 }
 0x24d   :  { %v1673_v50 = vpack.c.bf16 %v1669_v54, %v1669_v54 }
 0x24e   :  { %v1670_v9 = vsel %vm1662_vm7, %v1658_v52, %v1666_v53 }
 0x24f   :  { %v1674_v55 = vpack.c.bf16 %v1670_v9, %v1670_v9 }
 0x251   :  { %2010 = vmatprep.mubr.bf16.mxu1 %v1674_v55 }
 0x252   :  { %2011 = vmatmul.mubr.bf16.vlgmr.msra.gmra.mxu1 %v1673_v50 }
 0x253   :  { %2730 = vmatpush3.bf16.msra.mxu1 %v3093_v6  ;;  %2355 = vmatprep.mubr.bf16.mxu1 %v1674_v55 }
 0x254   :  { %2731 = vmatprep.subr.bf16.mxu1 %v3094_v56 }
 0x257   :  { %2732 = vmatpush3.bf16.msra.mxu1 %v3095_v12 }
 0x258   :  { %2733 = vmatprep.subr.bf16.mxu1 %v3096_v7 }
 0x25b   :  { %2734 = vmatpush3.bf16.msra.mxu1 %v3097_v57 }
 0x25c   :  { %2735 = vmatprep.subr.bf16.mxu1 %v3098_v58 }
 0x25f   :  { %2736 = vmatpush3.bf16.msra.mxu1 %v3099_v59 }
 0x260   :  { %2737 = vmatprep.subr.bf16.mxu1 %v3100_v60 }
 0x263   :  { %2738 = vmatpush3.bf16.msra.mxu1 %v3101_v61 }
 0x264   :  { %2739 = vmatprep.subr.bf16.mxu1 %v3102_v62 }
 0x267   :  { %2740 = vmatpush3.bf16.msra.mxu1 %v3103_v63 }
 0x268   :  { %2741 = vmatprep.subr.bf16.mxu1 %v3104_v0 }
 0x26b   :  { %2742 = vmatpush3.bf16.msra.mxu1 %v3105_v1 }
 0x26c   :  { %2743 = vmatprep.subr.bf16.mxu1 %v3106_v2 }
 0x26f   :  { %2744 = vmatpush3.bf16.msra.mxu1 %v3107_v3 }
 0x272   :  { %2356 = vmatmul.mubr.bf16.vlgmr.msra.gmra.mxu1 %v1673_v50 }
 0x2d2   :  { %v2679_v4 = vpop.f32.mrf.mxu0 }
 0x2d4   :  { %v2680_v5 = vpop.f32.mrf.mxu0 }
 0x2d5   :  { %v2681_v19 = vadd.f32 %v2680_v5, %v2679_v4 }
 0x2d6   :  { %v2682_v10 = vpop.f32.mrf.mxu0 }
 0x2d7   :  { %v1973_v23 = vadd.f32 %v2681_v19, %v2597_v20 }
 0x2d8   :  { %v2683_v13 = vpop.f32.mrf.mxu0 }
 0x2f2   :  { %v2723_v14 = vpop.f32.mrf.mxu0 }
 0x2f4   :  { %v2724_v15 = vpop.f32.mrf.mxu0 }
 0x2f5   :  { %v2725_v28 = vadd.f32 %v2724_v15, %v2723_v14 }
 0x2f6   :  { %v2726_v16 = vpop.f32.mrf.mxu0 }
 0x2f7   :  { %v2318_v30 = vadd.f32 %v2725_v28, %v2630_v29 }
 0x2f8   :  { %v2727_v18 = vpop.f32.mrf.mxu0 }
 0x312   :  { %v2701_v21 = vpop.f32.mrf.mxu1 }
 0x314   :  { %v2702_v22 = vpop.f32.mrf.mxu1 }
 0x315   :  { %v2703_v25 = vadd.f32 %v2702_v22, %v2701_v21 }
 0x316   :  { %v2704_v24 = vpop.f32.mrf.mxu1 }
 0x317   :  { %v2013_v26 = vadd.f32 %v2703_v25, %v1973_v23 }
 0x318   :  { %v2705_v27 = vpop.f32.mrf.mxu1 }
 0x319   :  { %2019 = vst.msk [vmem:[#allocation5] sm:$0xff] %vm2018_vm8, %v2013_v26 }
 0x332   :  { %v2745_v31 = vpop.f32.mrf.mxu1 }
 0x334   :  { %v2746_v8 = vpop.f32.mrf.mxu1 }
 0x335   :  { %v2747_v11 = vadd.f32 %v2746_v8, %v2745_v31 }
 0x336   :  { %v2748_v33 = vpop.f32.mrf.mxu1 }
 0x337   :  { %v2358_v34 = vadd.f32 %v2747_v11, %v2318_v30 }
 0x338   :  { %v2749_v35 = vpop.f32.mrf.mxu1 }
 0x339   :  { %v2364_v36 = vsel %vm2363_vm9, %v2358_v34, -inf }
 0x33a   :  { %2365 = vmax.xlane.f32.xlu0 %v2364_v36 }
 0x3c3   :  { %v2366_v37 = vpop.xlane.xlu0 %2365 }
 0x3c4   :  { %v2367_v38 = vsub.f32 %v2358_v34, %v2366_v37 }
 0x3c6   :  { %v2368_v40 = vmul.f32 1.442695, %v2367_v38 }
 0x3c8   :  { %3116 = vpow2.f32 %v2368_v40 }
 0x3d5   :  { %v3117_v41 = vpop.eup %3116 }
 0x3d6   :  { %v2370_v43 = vsel %vm2363_vm9, %v3117_v41, 0.0 }
 0x3d7   :  { %2371 = vadd.xlane.f32.xlu0 %v2370_v43 }
 0x3d8   :  { %3151 = shalt.err (!%p3148_p9)
}
 0x3d9   :  { %2385 = dma.vmem_to_hbm [thread:$0]  %s2383_s10, 128, %s3755_s11, [#allocation4]  }
 0x3da   :  { %s3190_s25 = smov [#allocation6]  }
 0x3db   :  { %s2392_s26 = sshll.u32 %s3190_s25, 4  ;;  %s2393_s26 = int_to_ptr.vmem [resolvable:$true] %s2392_s26 }
 0x3dc   :  { %s3160_s0 = scalar_lea.vmem %s2393_s26, 128  ;;  %p3165_p11 = scmp.lt.s32.totalorder %s2393_s26, %s2393_s26 }
 0x3dd   :  { %p3161_p10 = scmp.ne.s32.totalorder %s2393_s26, %s3160_s0  ;;  %p3166_p12 = scmp.lt.s32.totalorder %s3160_s0, %s3160_s0 }
 0x3df   :  { %p3167_p13 = por %p3166_p12, %p3165_p11 }
 0x3e1   :  { %p3168_p0 = pnand %p3167_p13, %p3161_p10 }
 0x460   :  { %v2372_v44 = vpop.xlane.xlu0 %2371 }
 0x461   :  { %3118 = vrcp.f32 %v2372_v44 }
 0x46e   :  { %v3119_v45 = vpop.eup %3118 }
 0x46f   :  { %v2374_v46 = vmul.f32 %v3119_v45, %v3117_v41 }
 0x471   :  { %2375 = vst.msk [vmem:[#allocation6] sm:$0xff] %vm2363_vm9, %v2374_v46 }
 0x472   :  { %3171 = shalt.err (!%p3168_p0)
}
 0x473   :  { %2395 = dma.vmem_to_hbm [thread:$0]  %s2393_s26, 128, %s3756_s12, [#allocation7]  }
 0x474   :  { %3182 = dma.done.wait [#allocation4], 128  }
 0x475   :  { %3183 = vsyncadd [#allocation4], 4294967168 }
 0x476   :  { %3184 = dma.done.wait [#allocation7], 128  }
 0x477   :  { %3185 = vsyncadd [#allocation7], 4294967168 }
 0x478   :  { %2402 = vsyncpa [#allocation3], 1 }
 0x479   :  { %2403 = vsyncpa [#allocation4], 1 }
 0x47a   :  { %2404 = vsyncpa [#allocation7], 1 }

</bundles_post_ra>
